<compile_context>
chip_gen: v6e
topology: v6e:2x2x1
jax: 0.10.0
libtpu: 0.0.40
codegen_flags: <defaults>
</compile_context>

<pallas_src>
import functools
import math

import jax
import jax.numpy as jnp
import numpy as np
from jax import lax
from jax.experimental import pallas as pl
from jax.experimental.pallas import tpu as pltpu

# ---------------------------------------------------------------------------
# Module configuration (matches Conv2d_NN_Attn_V.__init__ for 'BA' + loc)
# ---------------------------------------------------------------------------
BATCH = 2
IN_CHANNELS = 4
OUT_CHANNELS = 4
NUM_HEADS = 2
SHUFFLE_PATTERN = "BA"          # unshuffle Before, shuffle After
SHUFFLE_SCALE = 2
LOCATION_CHANNELS = True
HEIGHT = 16
WIDTH = 16

IN_CHANNELS_1D = (IN_CHANNELS + 2) * SHUFFLE_SCALE ** 2      # 24
OUT_CHANNELS_1D = (OUT_CHANNELS + 2) * SHUFFLE_SCALE ** 2    # 24
HEAD_DIM = OUT_CHANNELS_1D // NUM_HEADS                      # 12 (true MHA head dim)
HEAD_PAD = 16                                                # padded head width (aligned)
SEQ_LEN = (HEIGHT // SHUFFLE_SCALE) * (WIDTH // SHUFFLE_SCALE)  # 64 tokens
FINAL_CHANNELS = OUT_CHANNELS * SHUFFLE_SCALE ** 2           # 16 real output channels
QKV_LANES = 128      # 3 * NUM_HEADS * HEAD_PAD = 96, padded to one 128-lane vreg
OUT_LANES = 128      # FINAL_CHANNELS padded to 128 for unmasked (lane-dense) stores


# ---------------------------------------------------------------------------
# Chip-dependent grid choice: parallel over batch only where it buys TC sharding
# ---------------------------------------------------------------------------
def _use_batch_grid() -> bool:
    """True on chips with >1 TensorCore per Pallas device (v7x, v4/v5p megacore)."""
    try:
        kind = jax.devices()[0].device_kind.lower()
    except Exception:
        return False
    return any(m in kind for m in ("v7", "v4", "v5p"))


# ---------------------------------------------------------------------------
# Pallas kernel: fused Attention1d + (pixel-shuffle ∘ pointwise conv)
#   x:(bb,N,Cin) bf16 -> qkv matmul -> per-head softmax attention
#   -> per-head fused out-proj accumulation -> (bb,N,128) f32 (lane-dense)
# ---------------------------------------------------------------------------
def _attention1d_fused_kernel(x_ref, wqkv_ref, b_ref, wout_ref, o_ref,
                              *, bb, num_heads, head_pad, scale):
    wqkv = wqkv_ref[...]            # (Cin, 128) bf16, zero-padded columns
    b_qkv = b_ref[0:1, :]           # (1, 128) f32  (padded lanes are zero)
    b_out = b_ref[1:2, :]           # (1, 128) f32  (first 16 lanes real)

    for b in range(bb):             # static unroll: bb = 1 (per-TC) or B (1-TC chips)
        x = x_ref[b]                # (N, Cin) bf16, token-major

        # Fused q/k/v projection (Conv1d(k=1) + MHA in-proj): one MXU matmul,
        # all 6 head blocks land at 16-lane-aligned offsets inside one vreg row.
        qkv = jnp.dot(x, wqkv, preferred_element_type=jnp.float32) + b_qkv  # (N,128)

        acc = None
        for h in range(num_heads):  # static, unrolled (2 iters)
            q0 = h * head_pad
            k0 = (num_heads + h) * head_pad
            v0 = (2 * num_heads + h) * head_pad
            qh = qkv[:, q0:q0 + head_pad].astype(jnp.bfloat16)   # (N, 16)
            kh = qkv[:, k0:k0 + head_pad].astype(jnp.bfloat16)   # (N, 16)
            vh = qkv[:, v0:v0 + head_pad].astype(jnp.bfloat16)   # (N, 16)

            # scores = qh @ kh^T (padded head columns are zero -> no effect)
            s = lax.dot_general(qh, kh, (((1,), (1,)), ((), ())),
                                preferred_element_type=jnp.float32) * scale  # (N,N)
            s = s - jnp.max(s, axis=-1, keepdims=True)
            e = jnp.exp(s)                                        # EUP
            p = e * pl.reciprocal(jnp.sum(e, axis=-1, keepdims=True))  # exact recip

            ah = jnp.dot(p.astype(jnp.bfloat16), vh,
                         preferred_element_type=jnp.float32)      # (N, 16)
            # Accumulate per-head slice of the fused (out-proj @ shuffle @ 1x1 conv)
            # weight instead of concatenating heads; 128 output lanes -> dense vst.
            part = jnp.dot(ah.astype(jnp.bfloat16), wout_ref[h],
                           preferred_element_type=jnp.float32)    # (N, 128)
            acc = part if acc is None else acc + part

        o_ref[b] = (acc + b_out).astype(o_ref.dtype)              # unmasked 128-lane store


def attention1d_pallas(x_tokens, fp):
    """x_tokens: (B, N, Cin) bf16 -> (B, N, OUT_LANES) f32 (first 16 lanes real)."""
    B, N, Cin = x_tokens.shape
    # v7x (and other multi-TC chips): one batch per grid step, sharded over TCs.
    # v5e/v6e (single TC): collapse the grid -> no per-step overhead, weights
    # DMA'd/pinned exactly once.
    bb = 1 if (_use_batch_grid() and B > 1) else B
    grid_b = B // bb

    def rep(arr):
        nd = arr.ndim
        return pl.BlockSpec(arr.shape, lambda i, nd=nd: (0,) * nd)

    kernel = functools.partial(_attention1d_fused_kernel,
                               bb=bb, num_heads=NUM_HEADS, head_pad=HEAD_PAD,
                               scale=1.0 / math.sqrt(HEAD_DIM))
    return pl.pallas_call(
        kernel,
        out_shape=jax.ShapeDtypeStruct((B, N, OUT_LANES), jnp.float32),
        grid=(grid_b,),
        in_specs=[pl.BlockSpec((bb, N, Cin), lambda i: (i, 0, 0)),
                  rep(fp["w_qkv"]), rep(fp["b_all"]), rep(fp["w_out"])],
        out_specs=pl.BlockSpec((bb, N, OUT_LANES), lambda i: (i, 0, 0)),
        compiler_params=pltpu.CompilerParams(
            dimension_semantics=("parallel",)),
    )(x_tokens, fp["w_qkv"], fp["b_all"], fp["w_out"])


# ---------------------------------------------------------------------------
# Algebraic weight fusion + aligned packing (done once, outside the kernel)
# ---------------------------------------------------------------------------
def fuse_params(p):
    r2 = SHUFFLE_SCALE ** 2
    # Conv1d(k=1) projection followed by MHA in-projection -> one matrix each.
    wq_f = p["wq"] @ p["wqi"]; bq_f = p["bq"] @ p["wqi"] + p["bqi"]
    wk_f = p["wk"] @ p["wki"]; bk_f = p["bk"] @ p["wki"] + p["bki"]
    wv_f = p["wv"] @ p["wvi"]; bv_f = p["bv"] @ p["wvi"] + p["bvi"]

    # pixel_shuffle followed by the 1x1 pointwise conv is a block-diagonal
    # linear map on the 24 token channels: kron(wp, I_{r^2}).
    shuf = jnp.kron(p["wp"], jnp.eye(r2, dtype=p["wp"].dtype))   # (24, 16)
    w_final = p["wo"] @ shuf                                     # (24, 16)
    b_final = p["bo"] @ shuf + jnp.kron(p["bp"],
                                        jnp.ones((1, r2), p["bp"].dtype))  # (1, 16)

    # Pack q/k/v heads at 16-lane-aligned offsets, zero-pad head dim 12->16 and
    # total lanes 96->128 (padding contributes exactly zero to scores/outputs).
    w_qkv = jnp.zeros((IN_CHANNELS_1D, QKV_LANES), jnp.float32)
    b_qkv = jnp.zeros((QKV_LANES,), jnp.float32)
    for g, (wf, bf) in enumerate(((wq_f, bq_f), (wk_f, bk_f), (wv_f, bv_f))):
        for h in range(NUM_HEADS):
            off = (g * NUM_HEADS + h) * HEAD_PAD
            w_qkv = w_qkv.at[:, off:off + HEAD_DIM].set(
                wf[:, h * HEAD_DIM:(h + 1) * HEAD_DIM])
            b_qkv = b_qkv.at[off:off + HEAD_DIM].set(
                bf[0, h * HEAD_DIM:(h + 1) * HEAD_DIM])

    # Per-head rows of the fused final map, padded 12->16 rows and 16->128 cols.
    w_out = jnp.zeros((NUM_HEADS, HEAD_PAD, OUT_LANES), jnp.float32)
    for h in range(NUM_HEADS):
        w_out = w_out.at[h, :HEAD_DIM, :FINAL_CHANNELS].set(
            w_final[h * HEAD_DIM:(h + 1) * HEAD_DIM, :])
    b_out = jnp.zeros((OUT_LANES,), jnp.float32).at[:FINAL_CHANNELS].set(b_final[0])

    return {
        "w_qkv": w_qkv.astype(jnp.bfloat16),                     # (24, 128) bf16
        "w_out": w_out.astype(jnp.bfloat16),                     # (2, 16, 128) bf16
        "b_all": jnp.stack([b_qkv, b_out], axis=0).astype(jnp.float32),  # (2, 128)
    }


# ---------------------------------------------------------------------------
# Plain-JAX glue reproducing the PyTorch forward for pattern 'BA' + loc
# ---------------------------------------------------------------------------
def coordinate_channels(shape):
    B, _, H, W = shape
    xg, yg = jnp.meshgrid(jnp.arange(H, dtype=jnp.float32),
                          jnp.arange(W, dtype=jnp.float32), indexing="ij")
    norm = jnp.maximum(jnp.sqrt(xg * xg + yg * yg), 1e-12)   # F.normalize(p=2, dim=1)
    coords = jnp.stack([xg / norm, yg / norm], axis=0)        # (2, H, W)
    return jnp.broadcast_to(coords[None], (B, 2, H, W))


def pixel_unshuffle(x, r):
    B, C, H, W = x.shape
    x = x.reshape(B, C, H // r, r, W // r, r)
    x = x.transpose(0, 1, 3, 5, 2, 4)
    return x.reshape(B, C * r * r, H // r, W // r)


def pixel_shuffle(x, r):
    B, Crr, H, W = x.shape
    C = Crr // (r * r)
    x = x.reshape(B, C, r, r, H, W)
    x = x.transpose(0, 1, 4, 2, 5, 3)
    return x.reshape(B, C, H * r, W * r)


def attention2d_forward(x, fp):
    B, C, H, W = x.shape
    r = SHUFFLE_SCALE
    # pattern 'B' side: coords + unshuffle
    coords = coordinate_channels(x.shape)
    x_cat = jnp.concatenate([x, coords], axis=1)             # (B, C+2, H, W)
    x1 = pixel_unshuffle(x_cat, r)                           # (B, 24, H/r, W/r)
    Hs, Ws = H // r, W // r
    # flatten(start_dim=2) + token-major layout, bf16 MXU operands (fuses with
    # the unshuffle copy on the XLA side).
    x_tokens = jnp.transpose(x1.reshape(B, IN_CHANNELS_1D, Hs * Ws), (0, 2, 1))
    x_tokens = x_tokens.astype(jnp.bfloat16)                 # (B, N, 24)
    # Attention1d + out-proj + (shuffle ∘ pointwise conv) fused into one kernel.
    y = attention1d_pallas(x_tokens, fp)                     # (B, N, 128) f32
    y = y[..., :FINAL_CHANNELS]                              # fuses with transpose
    y = jnp.transpose(y, (0, 2, 1)).reshape(B, FINAL_CHANNELS, Hs, Ws)
    # pattern 'A' side: only the layout shuffle remains (conv already folded in)
    return pixel_shuffle(y, r)                               # (B, OUT, H, W)


# ---------------------------------------------------------------------------
# Pure-JAX f32 reference (unfused, mirrors the PyTorch module semantics)
# ---------------------------------------------------------------------------
def attention1d_ref(xt, p):
    q = xt @ p["wq"] + p["bq"]
    k = xt @ p["wk"] + p["bk"]
    v = xt @ p["wv"] + p["bv"]
    q = q @ p["wqi"] + p["bqi"]
    k = k @ p["wki"] + p["bki"]
    v = v @ p["wvi"] + p["bvi"]
    B, N, C = q.shape
    qh = q.reshape(B, N, NUM_HEADS, HEAD_DIM).transpose(0, 2, 1, 3)
    kh = k.reshape(B, N, NUM_HEADS, HEAD_DIM).transpose(0, 2, 1, 3)
    vh = v.reshape(B, N, NUM_HEADS, HEAD_DIM).transpose(0, 2, 1, 3)
    s = jnp.einsum("bhnd,bhmd->bhnm", qh, kh) / math.sqrt(HEAD_DIM)
    a = jnp.einsum("bhnm,bhmd->bhnd", jax.nn.softmax(s, axis=-1), vh)
    a = a.transpose(0, 2, 1, 3).reshape(B, N, C)
    return a @ p["wo"] + p["bo"]


def attention2d_ref(x, params):
    B, C, H, W = x.shape
    r = SHUFFLE_SCALE
    coords = coordinate_channels(x.shape)
    x1 = pixel_unshuffle(jnp.concatenate([x, coords], axis=1), r)
    Hs, Ws = H // r, W // r
    x2 = x1.reshape(B, x1.shape[1], Hs * Ws)
    y = attention1d_ref(jnp.transpose(x2, (0, 2, 1)), params)
    x4 = jnp.transpose(y, (0, 2, 1)).reshape(B, OUT_CHANNELS_1D, Hs, Ws)
    x4s = pixel_shuffle(x4, r)
    y5 = jnp.einsum("bchw,cd->bdhw", x4s, params["wp"]) \
        + params["bp"][0][None, :, None, None]
    return y5


# ---------------------------------------------------------------------------
# Deterministic parameter init (unfused, PyTorch-module-shaped)
# ---------------------------------------------------------------------------
def init_params(key):
    C_in, C_out = IN_CHANNELS_1D, OUT_CHANNELS_1D
    names_shapes = [
        ("wq", (C_in, C_out)), ("bq", (1, C_out)),
        ("wk", (C_in, C_out)), ("bk", (1, C_out)),
        ("wv", (C_in, C_out)), ("bv", (1, C_out)),
        ("wqi", (C_out, C_out)), ("bqi", (1, C_out)),
        ("wki", (C_out, C_out)), ("bki", (1, C_out)),
        ("wvi", (C_out, C_out)), ("bvi", (1, C_out)),
        ("wo", (C_out, C_out)), ("bo", (1, C_out)),
        ("wp", (OUT_CHANNELS + 2, OUT_CHANNELS)), ("bp", (1, OUT_CHANNELS)),
    ]
    params = {}
    keys = jax.random.split(key, len(names_shapes))
    for (name, shape), k in zip(names_shapes, keys):
        params[name] = (0.05 * jax.random.normal(k, shape)).astype(jnp.float32)
    return params


# ---------------------------------------------------------------------------
if __name__ == "__main__":
    root = jax.random.PRNGKey(0)
    k_x, k_p = jax.random.split(root)
    x = jax.random.normal(k_x, (BATCH, IN_CHANNELS, HEIGHT, WIDTH), jnp.float32)
    params = init_params(k_p)
    fused = fuse_params(params)          # fused + aligned bf16 weights live in HBM

    out = jax.jit(attention2d_forward)(x, fused)
    out = jax.block_until_ready(out)
    assert out.shape == (BATCH, OUT_CHANNELS, HEIGHT, WIDTH), out.shape

    ref = jax.block_until_ready(attention2d_ref(x, params))
    # bf16 MXU operands (f32 accumulate); softmax reciprocal is exact now.
    np.testing.assert_allclose(np.asarray(out), np.asarray(ref),
                               rtol=3e-2, atol=5e-3)
    print("KERNEL_OK")
</pallas_src>

<mosaic_0001>
module attributes {stable_mosaic.version = 11 : i64} {
  func.func @_attention1d_fused_kernel(%arg0: i32, %arg1: memref<2x64x24xbf16, #tpu.memory_space<vmem>>, %arg2: memref<24x128xbf16, #tpu.memory_space<vmem>>, %arg3: memref<2x128xf32, #tpu.memory_space<vmem>>, %arg4: memref<2x16x128xbf16, #tpu.memory_space<vmem>>, %arg5: memref<2x64x128xf32, #tpu.memory_space<vmem>>) attributes {dimension_semantics = [#tpu.dimension_semantics<parallel>], iteration_bounds = array<i64: 1>, scalar_prefetch = 0 : i64, scratch_operands = 0 : i64, tpu.core_type = #tpu.core_type<tc>, window_params = [{transform_indices = @transform_0, window_bounds = array<i64: 2, 64, 24>}, {pipeline_mode = #tpu.pipeline_mode<synchronous>, transform_indices = @transform_1, window_bounds = array<i64: 24, 128>}, {pipeline_mode = #tpu.pipeline_mode<synchronous>, transform_indices = @transform_2, window_bounds = array<i64: 2, 128>}, {pipeline_mode = #tpu.pipeline_mode<synchronous>, transform_indices = @transform_3, window_bounds = array<i64: 2, 16, 128>}, {transform_indices = @transform_4, window_bounds = array<i64: 2, 64, 128>}]} {
    %c0 = arith.constant 0 : index
    %c0_0 = arith.constant 0 : index
    %0 = vector.load %arg2[%c0, %c0_0] : memref<24x128xbf16, #tpu.memory_space<vmem>>, vector<24x128xbf16>
    %c0_1 = arith.constant 0 : index
    %c0_2 = arith.constant 0 : index
    %1 = vector.load %arg3[%c0_1, %c0_2] : memref<2x128xf32, #tpu.memory_space<vmem>>, vector<1x128xf32>
    %c1 = arith.constant 1 : index
    %c0_3 = arith.constant 0 : index
    %2 = vector.load %arg3[%c1, %c0_3] : memref<2x128xf32, #tpu.memory_space<vmem>>, vector<1x128xf32>
    %c0_4 = arith.constant 0 : index
    %c0_5 = arith.constant 0 : index
    %c0_6 = arith.constant 0 : index
    %3 = vector.load %arg1[%c0_4, %c0_5, %c0_6] : memref<2x64x24xbf16, #tpu.memory_space<vmem>>, vector<1x64x24xbf16>
    %4 = vector.shape_cast %3 : vector<1x64x24xbf16> to vector<64x24xbf16>
    %cst = arith.constant dense<0.000000e+00> : vector<64x128xf32>
    %5 = tpu.matmul %4, %0, %cst {dimension_numbers = #tpu.dot_dimension_numbers<[1], [0], [0], [1], [0, 0, 1, 1], [], []>} : vector<64x24xbf16>, vector<24x128xbf16>, vector<64x128xf32> -> vector<64x128xf32>
    %6 = vector.broadcast %1 : vector<1x128xf32> to vector<64x128xf32>
    %7 = arith.addf %5, %6 : vector<64x128xf32>
    %8 = vector.extract_strided_slice %7 {offsets = [0, 0], sizes = [64, 16], strides = [1, 1]} : vector<64x128xf32> to vector<64x16xf32>
    %9 = arith.truncf %8 : vector<64x16xf32> to vector<64x16xbf16>
    %10 = vector.extract_strided_slice %7 {offsets = [0, 32], sizes = [64, 16], strides = [1, 1]} : vector<64x128xf32> to vector<64x16xf32>
    %11 = arith.truncf %10 : vector<64x16xf32> to vector<64x16xbf16>
    %12 = vector.extract_strided_slice %7 {offsets = [0, 64], sizes = [64, 16], strides = [1, 1]} : vector<64x128xf32> to vector<64x16xf32>
    %13 = arith.truncf %12 : vector<64x16xf32> to vector<64x16xbf16>
    %cst_7 = arith.constant dense<0.000000e+00> : vector<64x64xf32>
    %14 = tpu.matmul %9, %11, %cst_7 {dimension_numbers = #tpu.dot_dimension_numbers<[1], [1], [0], [0], [0, 0, 1, 0], [], []>} : vector<64x16xbf16>, vector<64x16xbf16>, vector<64x64xf32> -> vector<64x64xf32>
    %cst_8 = arith.constant 0.288675129 : f32
    %15 = vector.broadcast %cst_8 : f32 to vector<64x64xf32>
    %16 = arith.mulf %14, %15 : vector<64x64xf32>
    %cst_9 = arith.constant dense<0xFF800000> : vector<64xf32>
    %17 = vector.multi_reduction <maximumf>, %16, %cst_9 [1] : vector<64x64xf32> to vector<64xf32>
    %18 = vector.shape_cast %17 : vector<64xf32> to vector<64x1xf32>
    %19 = vector.broadcast %18 : vector<64x1xf32> to vector<64x64xf32>
    %20 = arith.subf %16, %19 : vector<64x64xf32>
    %21 = math.exp %20 : vector<64x64xf32>
    %cst_10 = arith.constant dense<0.000000e+00> : vector<64xf32>
    %22 = vector.multi_reduction <add>, %21, %cst_10 [1] : vector<64x64xf32> to vector<64xf32>
    %23 = vector.shape_cast %22 : vector<64xf32> to vector<64x1xf32>
    %24 = tpu.reciprocal %23 : vector<64x1xf32> -> vector<64x1xf32>
    %25 = vector.broadcast %24 : vector<64x1xf32> to vector<64x64xf32>
    %26 = arith.mulf %21, %25 : vector<64x64xf32>
    %27 = arith.truncf %26 : vector<64x64xf32> to vector<64x64xbf16>
    %cst_11 = arith.constant dense<0.000000e+00> : vector<64x16xf32>
    %28 = tpu.matmul %27, %13, %cst_11 {dimension_numbers = #tpu.dot_dimension_numbers<[1], [0], [0], [1], [0, 0, 1, 1], [], []>} : vector<64x64xbf16>, vector<64x16xbf16>, vector<64x16xf32> -> vector<64x16xf32>
    %29 = arith.truncf %28 : vector<64x16xf32> to vector<64x16xbf16>
    %c0_12 = arith.constant 0 : index
    %c0_13 = arith.constant 0 : index
    %c0_14 = arith.constant 0 : index
    %30 = vector.load %arg4[%c0_12, %c0_13, %c0_14] : memref<2x16x128xbf16, #tpu.memory_space<vmem>>, vector<1x16x128xbf16>
    %31 = vector.shape_cast %30 : vector<1x16x128xbf16> to vector<16x128xbf16>
    %cst_15 = arith.constant dense<0.000000e+00> : vector<64x128xf32>
    %32 = tpu.matmul %29, %31, %cst_15 {dimension_numbers = #tpu.dot_dimension_numbers<[1], [0], [0], [1], [0, 0, 1, 1], [], []>} : vector<64x16xbf16>, vector<16x128xbf16>, vector<64x128xf32> -> vector<64x128xf32>
    %33 = vector.extract_strided_slice %7 {offsets = [0, 16], sizes = [64, 16], strides = [1, 1]} : vector<64x128xf32> to vector<64x16xf32>
    %34 = arith.truncf %33 : vector<64x16xf32> to vector<64x16xbf16>
    %35 = vector.extract_strided_slice %7 {offsets = [0, 48], sizes = [64, 16], strides = [1, 1]} : vector<64x128xf32> to vector<64x16xf32>
    %36 = arith.truncf %35 : vector<64x16xf32> to vector<64x16xbf16>
    %37 = vector.extract_strided_slice %7 {offsets = [0, 80], sizes = [64, 16], strides = [1, 1]} : vector<64x128xf32> to vector<64x16xf32>
    %38 = arith.truncf %37 : vector<64x16xf32> to vector<64x16xbf16>
    %cst_16 = arith.constant dense<0.000000e+00> : vector<64x64xf32>
    %39 = tpu.matmul %34, %36, %cst_16 {dimension_numbers = #tpu.dot_dimension_numbers<[1], [1], [0], [0], [0, 0, 1, 0], [], []>} : vector<64x16xbf16>, vector<64x16xbf16>, vector<64x64xf32> -> vector<64x64xf32>
    %cst_17 = arith.constant 0.288675129 : f32
    %40 = vector.broadcast %cst_17 : f32 to vector<64x64xf32>
    %41 = arith.mulf %39, %40 : vector<64x64xf32>
    %cst_18 = arith.constant dense<0xFF800000> : vector<64xf32>
    %42 = vector.multi_reduction <maximumf>, %41, %cst_18 [1] : vector<64x64xf32> to vector<64xf32>
    %43 = vector.shape_cast %42 : vector<64xf32> to vector<64x1xf32>
    %44 = vector.broadcast %43 : vector<64x1xf32> to vector<64x64xf32>
    %45 = arith.subf %41, %44 : vector<64x64xf32>
    %46 = math.exp %45 : vector<64x64xf32>
    %cst_19 = arith.constant dense<0.000000e+00> : vector<64xf32>
    %47 = vector.multi_reduction <add>, %46, %cst_19 [1] : vector<64x64xf32> to vector<64xf32>
    %48 = vector.shape_cast %47 : vector<64xf32> to vector<64x1xf32>
    %49 = tpu.reciprocal %48 : vector<64x1xf32> -> vector<64x1xf32>
    %50 = vector.broadcast %49 : vector<64x1xf32> to vector<64x64xf32>
    %51 = arith.mulf %46, %50 : vector<64x64xf32>
    %52 = arith.truncf %51 : vector<64x64xf32> to vector<64x64xbf16>
    %cst_20 = arith.constant dense<0.000000e+00> : vector<64x16xf32>
    %53 = tpu.matmul %52, %38, %cst_20 {dimension_numbers = #tpu.dot_dimension_numbers<[1], [0], [0], [1], [0, 0, 1, 1], [], []>} : vector<64x64xbf16>, vector<64x16xbf16>, vector<64x16xf32> -> vector<64x16xf32>
    %54 = arith.truncf %53 : vector<64x16xf32> to vector<64x16xbf16>
    %c1_21 = arith.constant 1 : index
    %c0_22 = arith.constant 0 : index
    %c0_23 = arith.constant 0 : index
    %55 = vector.load %arg4[%c1_21, %c0_22, %c0_23] : memref<2x16x128xbf16, #tpu.memory_space<vmem>>, vector<1x16x128xbf16>
    %56 = vector.shape_cast %55 : vector<1x16x128xbf16> to vector<16x128xbf16>
    %cst_24 = arith.constant dense<0.000000e+00> : vector<64x128xf32>
    %57 = tpu.matmul %54, %56, %cst_24 {dimension_numbers = #tpu.dot_dimension_numbers<[1], [0], [0], [1], [0, 0, 1, 1], [], []>} : vector<64x16xbf16>, vector<16x128xbf16>, vector<64x128xf32> -> vector<64x128xf32>
    %58 = arith.addf %32, %57 : vector<64x128xf32>
    %59 = vector.broadcast %2 : vector<1x128xf32> to vector<64x128xf32>
    %60 = arith.addf %58, %59 : vector<64x128xf32>
    %c0_25 = arith.constant 0 : index
    %c0_26 = arith.constant 0 : index
    %c0_27 = arith.constant 0 : index
    %61 = vector.load %arg5[%c0_25, %c0_26, %c0_27] : memref<2x64x128xf32, #tpu.memory_space<vmem>>, vector<1x64x128xf32>
    %62 = vector.shape_cast %61 : vector<1x64x128xf32> to vector<64x128xf32>
    %63 = vector.shape_cast %60 : vector<64x128xf32> to vector<1x64x128xf32>
    tpu.vector_store %arg5[%c0_25, %c0_26, %c0_27], %63 {strides = array<i32>} : memref<2x64x128xf32, #tpu.memory_space<vmem>>, vector<1x64x128xf32>,
    %c1_28 = arith.constant 1 : index
    %c0_29 = arith.constant 0 : index
    %c0_30 = arith.constant 0 : index
    %64 = vector.load %arg1[%c1_28, %c0_29, %c0_30] : memref<2x64x24xbf16, #tpu.memory_space<vmem>>, vector<1x64x24xbf16>
    %65 = vector.shape_cast %64 : vector<1x64x24xbf16> to vector<64x24xbf16>
    %cst_31 = arith.constant dense<0.000000e+00> : vector<64x128xf32>
    %66 = tpu.matmul %65, %0, %cst_31 {dimension_numbers = #tpu.dot_dimension_numbers<[1], [0], [0], [1], [0, 0, 1, 1], [], []>} : vector<64x24xbf16>, vector<24x128xbf16>, vector<64x128xf32> -> vector<64x128xf32>
    %67 = vector.broadcast %1 : vector<1x128xf32> to vector<64x128xf32>
    %68 = arith.addf %66, %67 : vector<64x128xf32>
    %69 = vector.extract_strided_slice %68 {offsets = [0, 0], sizes = [64, 16], strides = [1, 1]} : vector<64x128xf32> to vector<64x16xf32>
    %70 = arith.truncf %69 : vector<64x16xf32> to vector<64x16xbf16>
    %71 = vector.extract_strided_slice %68 {offsets = [0, 32], sizes = [64, 16], strides = [1, 1]} : vector<64x128xf32> to vector<64x16xf32>
    %72 = arith.truncf %71 : vector<64x16xf32> to vector<64x16xbf16>
    %73 = vector.extract_strided_slice %68 {offsets = [0, 64], sizes = [64, 16], strides = [1, 1]} : vector<64x128xf32> to vector<64x16xf32>
    %74 = arith.truncf %73 : vector<64x16xf32> to vector<64x16xbf16>
    %cst_32 = arith.constant dense<0.000000e+00> : vector<64x64xf32>
    %75 = tpu.matmul %70, %72, %cst_32 {dimension_numbers = #tpu.dot_dimension_numbers<[1], [1], [0], [0], [0, 0, 1, 0], [], []>} : vector<64x16xbf16>, vector<64x16xbf16>, vector<64x64xf32> -> vector<64x64xf32>
    %cst_33 = arith.constant 0.288675129 : f32
    %76 = vector.broadcast %cst_33 : f32 to vector<64x64xf32>
    %77 = arith.mulf %75, %76 : vector<64x64xf32>
    %cst_34 = arith.constant dense<0xFF800000> : vector<64xf32>
    %78 = vector.multi_reduction <maximumf>, %77, %cst_34 [1] : vector<64x64xf32> to vector<64xf32>
    %79 = vector.shape_cast %78 : vector<64xf32> to vector<64x1xf32>
    %80 = vector.broadcast %79 : vector<64x1xf32> to vector<64x64xf32>
    %81 = arith.subf %77, %80 : vector<64x64xf32>
    %82 = math.exp %81 : vector<64x64xf32>
    %cst_35 = arith.constant dense<0.000000e+00> : vector<64xf32>
    %83 = vector.multi_reduction <add>, %82, %cst_35 [1] : vector<64x64xf32> to vector<64xf32>
    %84 = vector.shape_cast %83 : vector<64xf32> to vector<64x1xf32>
    %85 = tpu.reciprocal %84 : vector<64x1xf32> -> vector<64x1xf32>
    %86 = vector.broadcast %85 : vector<64x1xf32> to vector<64x64xf32>
    %87 = arith.mulf %82, %86 : vector<64x64xf32>
    %88 = arith.truncf %87 : vector<64x64xf32> to vector<64x64xbf16>
    %cst_36 = arith.constant dense<0.000000e+00> : vector<64x16xf32>
    %89 = tpu.matmul %88, %74, %cst_36 {dimension_numbers = #tpu.dot_dimension_numbers<[1], [0], [0], [1], [0, 0, 1, 1], [], []>} : vector<64x64xbf16>, vector<64x16xbf16>, vector<64x16xf32> -> vector<64x16xf32>
    %90 = arith.truncf %89 : vector<64x16xf32> to vector<64x16xbf16>
    %c0_37 = arith.constant 0 : index
    %c0_38 = arith.constant 0 : index
    %c0_39 = arith.constant 0 : index
    %91 = vector.load %arg4[%c0_37, %c0_38, %c0_39] : memref<2x16x128xbf16, #tpu.memory_space<vmem>>, vector<1x16x128xbf16>
    %92 = vector.shape_cast %91 : vector<1x16x128xbf16> to vector<16x128xbf16>
    %cst_40 = arith.constant dense<0.000000e+00> : vector<64x128xf32>
    %93 = tpu.matmul %90, %92, %cst_40 {dimension_numbers = #tpu.dot_dimension_numbers<[1], [0], [0], [1], [0, 0, 1, 1], [], []>} : vector<64x16xbf16>, vector<16x128xbf16>, vector<64x128xf32> -> vector<64x128xf32>
    %94 = vector.extract_strided_slice %68 {offsets = [0, 16], sizes = [64, 16], strides = [1, 1]} : vector<64x128xf32> to vector<64x16xf32>
    %95 = arith.truncf %94 : vector<64x16xf32> to vector<64x16xbf16>
    %96 = vector.extract_strided_slice %68 {offsets = [0, 48], sizes = [64, 16], strides = [1, 1]} : vector<64x128xf32> to vector<64x16xf32>
    %97 = arith.truncf %96 : vector<64x16xf32> to vector<64x16xbf16>
    %98 = vector.extract_strided_slice %68 {offsets = [0, 80], sizes = [64, 16], strides = [1, 1]} : vector<64x128xf32> to vector<64x16xf32>
    %99 = arith.truncf %98 : vector<64x16xf32> to vector<64x16xbf16>
    %cst_41 = arith.constant dense<0.000000e+00> : vector<64x64xf32>
    %100 = tpu.matmul %95, %97, %cst_41 {dimension_numbers = #tpu.dot_dimension_numbers<[1], [1], [0], [0], [0, 0, 1, 0], [], []>} : vector<64x16xbf16>, vector<64x16xbf16>, vector<64x64xf32> -> vector<64x64xf32>
    %cst_42 = arith.constant 0.288675129 : f32
    %101 = vector.broadcast %cst_42 : f32 to vector<64x64xf32>
    %102 = arith.mulf %100, %101 : vector<64x64xf32>
    %cst_43 = arith.constant dense<0xFF800000> : vector<64xf32>
    %103 = vector.multi_reduction <maximumf>, %102, %cst_43 [1] : vector<64x64xf32> to vector<64xf32>
    %104 = vector.shape_cast %103 : vector<64xf32> to vector<64x1xf32>
    %105 = vector.broadcast %104 : vector<64x1xf32> to vector<64x64xf32>
    %106 = arith.subf %102, %105 : vector<64x64xf32>
    %107 = math.exp %106 : vector<64x64xf32>
    %cst_44 = arith.constant dense<0.000000e+00> : vector<64xf32>
    %108 = vector.multi_reduction <add>, %107, %cst_44 [1] : vector<64x64xf32> to vector<64xf32>
    %109 = vector.shape_cast %108 : vector<64xf32> to vector<64x1xf32>
    %110 = tpu.reciprocal %109 : vector<64x1xf32> -> vector<64x1xf32>
    %111 = vector.broadcast %110 : vector<64x1xf32> to vector<64x64xf32>
    %112 = arith.mulf %107, %111 : vector<64x64xf32>
    %113 = arith.truncf %112 : vector<64x64xf32> to vector<64x64xbf16>
    %cst_45 = arith.constant dense<0.000000e+00> : vector<64x16xf32>
    %114 = tpu.matmul %113, %99, %cst_45 {dimension_numbers = #tpu.dot_dimension_numbers<[1], [0], [0], [1], [0, 0, 1, 1], [], []>} : vector<64x64xbf16>, vector<64x16xbf16>, vector<64x16xf32> -> vector<64x16xf32>
    %115 = arith.truncf %114 : vector<64x16xf32> to vector<64x16xbf16>
    %c1_46 = arith.constant 1 : index
    %c0_47 = arith.constant 0 : index
    %c0_48 = arith.constant 0 : index
    %116 = vector.load %arg4[%c1_46, %c0_47, %c0_48] : memref<2x16x128xbf16, #tpu.memory_space<vmem>>, vector<1x16x128xbf16>
    %117 = vector.shape_cast %116 : vector<1x16x128xbf16> to vector<16x128xbf16>
    %cst_49 = arith.constant dense<0.000000e+00> : vector<64x128xf32>
    %118 = tpu.matmul %115, %117, %cst_49 {dimension_numbers = #tpu.dot_dimension_numbers<[1], [0], [0], [1], [0, 0, 1, 1], [], []>} : vector<64x16xbf16>, vector<16x128xbf16>, vector<64x128xf32> -> vector<64x128xf32>
    %119 = arith.addf %93, %118 : vector<64x128xf32>
    %120 = vector.broadcast %2 : vector<1x128xf32> to vector<64x128xf32>
    %121 = arith.addf %119, %120 : vector<64x128xf32>
    %c1_50 = arith.constant 1 : index
    %c0_51 = arith.constant 0 : index
    %c0_52 = arith.constant 0 : index
    %122 = vector.load %arg5[%c1_50, %c0_51, %c0_52] : memref<2x64x128xf32, #tpu.memory_space<vmem>>, vector<1x64x128xf32>
    %123 = vector.shape_cast %122 : vector<1x64x128xf32> to vector<64x128xf32>
    %124 = vector.shape_cast %121 : vector<64x128xf32> to vector<1x64x128xf32>
    tpu.vector_store %arg5[%c1_50, %c0_51, %c0_52], %124 {strides = array<i32>} : memref<2x64x128xf32, #tpu.memory_space<vmem>>, vector<1x64x128xf32>,
    return
  }
  func.func @transform_0(%arg0: i32) -> (i32, i32, i32) {
    %c0_i32 = arith.constant 0 : i32
    %c0_i32_0 = arith.constant 0 : i32
    %c0_i32_1 = arith.constant 0 : i32
    return %arg0, %c0_i32, %c0_i32_0 : i32, i32, i32
  }
  func.func @transform_1(%arg0: i32) -> (i32, i32) {
    %c0_i32 = arith.constant 0 : i32
    %c0_i32_0 = arith.constant 0 : i32
    %c0_i32_1 = arith.constant 0 : i32
    return %c0_i32, %c0_i32_0 : i32, i32
  }
  func.func @transform_2(%arg0: i32) -> (i32, i32) {
    %c0_i32 = arith.constant 0 : i32
    %c0_i32_0 = arith.constant 0 : i32
    %c0_i32_1 = arith.constant 0 : i32
    return %c0_i32, %c0_i32_0 : i32, i32
  }
  func.func @transform_3(%arg0: i32) -> (i32, i32, i32) {
    %c0_i32 = arith.constant 0 : i32
    %c0_i32_0 = arith.constant 0 : i32
    %c0_i32_1 = arith.constant 0 : i32
    %c0_i32_2 = arith.constant 0 : i32
    return %c0_i32, %c0_i32_0, %c0_i32_1 : i32, i32, i32
  }
  func.func @transform_4(%arg0: i32) -> (i32, i32, i32) {
    %c0_i32 = arith.constant 0 : i32
    %c0_i32_0 = arith.constant 0 : i32
    %c0_i32_1 = arith.constant 0 : i32
    return %arg0, %c0_i32, %c0_i32_0 : i32, i32, i32
  }
}

</mosaic_0001>

<bundles_post_ra>
// kernel: attention2d_forward.1
= control target key start
LH: loop header
LB: loop body
LE: loop exit
PB: predicated region body
PF: predicated region fallthrough
CT: control target
= control target key end

     0   :  { %vm77_vm0 = vcmask 1043456   ;;  %vm64_vm1 = vcmask 195584   ;;  %vm162_vm2 = vcmask 130048   ;;  %s2373_s28 = smov 96   ;;  %s2374_s29 = smov 64   ;;  %vm260_vm3 = vcmask 523264   ;;  %s2881_s1 = inlined_call_operand.vmem [shape: bf16[24,128], index: 1, kind: input, shape index: {}]   ;;  %s2882_s0 = inlined_call_operand.vmem [shape: bf16[2,64,24], index: 0, kind: input, shape index: {}]   ;;  %s2883_s2 = inlined_call_operand.vmem [shape: f32[2,128], index: 2, kind: input, shape index: {}]   ;;  %s2884_s3 = inlined_call_operand.vmem [shape: bf16[2,16,128], index: 3, kind: input, shape index: {}]   ;;  %s2885_s4 = inlined_call_operand.vmem [shape: f32[2,64,128], index: 4, kind: output, shape index: {}]  }
   0x1   :  { %v2406_v0 = vld [vmem:[%s2881_s1 + $0x8] ss:$0 sps:$4 sm:$0xff]   ;;  %v2411_v1 = vld [vmem:[%s2881_s1] sm:$0xff]   ;;  %v2235_v5 = vld [vmem:[%s2882_s0 + $0x10] sm:$0xff]   ;;  %s2375_s30 = smov 80   ;;  %s2376_s5 = smov 112  }
   0x2   :  { %2208 = vmatprep.subr.msk.bf16.mxu0 %vm77_vm0, %v2406_v0  ;;  %v2417_v2 = vsel %vm77_vm0, %v2406_v0, 0  ;;  %v2233_v3 = vld [vmem:[%s2882_s0] sm:$0xff]   ;;  %v2234_v4 = vld [vmem:[%s2882_s0 + $0x8] sm:$0xff]   ;;  %v2236_v6 = vld [vmem:[%s2882_s0 + $0x18] sm:$0xff]   ;;  %s2377_s8 = smov 48  }
   0x3   :  { %2017 = vmatpush3.bf16.msra.mxu0 %v2417_v2  ;;  %2020 = vmatprep.mubr.msk.bf16.mxu0 %vm64_vm1, %v2233_v3  ;;  %v2441_v8 = vld [vmem:[%s2883_s2] ss:$0 sm:$0xff] }
   0x4   :  { %2018 = vmatprep.subr.bf16.mxu0 %v2411_v1 }
   0x7   :  { %2019 = vmatpush3.bf16.msra.mxu0 %v2411_v1 }
   0xa   :  { %2021 = vmatmul.mubr.msk.bf16.vlgmr.msra.gmra.mxu0 %vm64_vm1, %v2234_v4 }
   0xb   :  { %2024 = vmatprep.mubr.msk.bf16.mxu0 %vm64_vm1, %v2235_v5 }
  0x12   :  { %2025 = vmatmul.mubr.msk.bf16.gmra.mxu0 %vm64_vm1, %v2236_v6 }
  0xca   :  { %v2022_v7 = vpop.f32.mrf.mxu0 }
  0xcb   :  { %v124_v11 = vadd.f32 %v2022_v7, %v2441_v8 }
  0xcc   :  { %v115_v9 = vpop.f32.mrf.mxu0 }
  0xcd   :  { %v116_v14 = vadd.f32 %v2441_v8, %v115_v9 }
  0xce   :  { %v2023_v10 = vpop.f32.mrf.mxu0 }
  0xcf   :  { %v127_v12 = vadd.f32 %v2023_v10, %v2441_v8 }
  0xd0   :  { %v118_v13 = vpop.f32.mrf.mxu0 }
  0xd1   :  { %v2446_v15 = vpack.c.bf16 %v127_v12, %v124_v11  ;;  %v119_v16 = vadd.f32 %v2441_v8, %v118_v13 }
  0xd2   :  { %v2026_v17 = vpop.f32.mrf.mxu0 }
  0xd3   :  { %v2449_v18 = vpack.c.bf16 %v119_v16, %v116_v14  ;;  %156 = vrot.lane.b32.xlu1 %v2446_v15, %s2373_s28  ;;  %v140_v21 = vadd.f32 %v2026_v17, %v2441_v8 }
  0xd4   :  { %v131_v19 = vpop.f32.mrf.mxu0 }
  0xd5   :  { %2036 = vmatprep.mubr.msk.bf16.mxu1 %vm162_vm2, %v2449_v18  ;;  %v132_v26 = vadd.f32 %v2441_v8, %v131_v19 }
  0xd6   :  { %v2027_v20 = vpop.f32.mrf.mxu0 }
  0xd7   :  { %v143_v22 = vadd.f32 %v2027_v20, %v2441_v8  ;;  %154 = vrot.lane.b32.xlu1 %v2449_v18, %s2373_s28 }
  0xd8   :  { %v134_v23 = vpop.f32.mrf.mxu0 }
  0xd9   :  { %v2459_v24 = vpack.c.bf16 %v143_v22, %v140_v21  ;;  %v135_v25 = vadd.f32 %v2441_v8, %v134_v23 }
  0xdb   :  { %160 = vrot.lane.b32.xlu0 %v2459_v24, %s2373_s28  ;;  %359 = vrot.lane.b32.xlu1 %v2459_v24, %s2374_s29  ;;  %v2467_v27 = vpack.c.bf16 %v135_v25, %v132_v26 }
  0xdf   :  { %158 = vrot.lane.b32.xlu0 %v2467_v27, %s2373_s28 }
 0x145   :  { %v157_v28 = vpop.permute.xlu1 %156 }
 0x146   :  { %v179_v35 = vsel %vm162_vm2, %v157_v28, 0 }
 0x149   :  { %v155_v29 = vpop.permute.xlu1 %154 }
 0x14a   :  { %v176_v36 = vsel %vm162_vm2, %v155_v29, 0 }
 0x14d   :  { %v161_v30 = vpop.permute.xlu0 %160  ;;  %v360_v31 = vpop.permute.xlu1 %359 }
 0x14e   :  { %2209 = vmatprep.subr.msk.bf16.mxu1 %vm162_vm2, %v161_v30  ;;  %2044 = vmatprep.subr.bf16.mxu0 %v360_v31  ;;  %v185_v32 = vsel %vm162_vm2, %v161_v30, 0 }
 0x14f   :  { %2029 = vmatpush3.bf16.xpose.msra.mxu1 %v185_v32  ;;  %2045 = vmatpush3.bf16.msra.mxu0 %v360_v31 }
 0x151   :  { %v159_v33 = vpop.permute.xlu0 %158 }
 0x152   :  { %2210 = vmatprep.subr.msk.bf16.mxu1 %vm162_vm2, %v159_v33  ;;  %v182_v34 = vsel %vm162_vm2, %v159_v33, 0 }
 0x157   :  { %2031 = vmatpush3.bf16.xpose.msra.mxu1 %v182_v34 }
 0x158   :  { %2211 = vmatprep.subr.msk.bf16.mxu1 %vm162_vm2, %v157_v28 }
 0x15f   :  { %2033 = vmatpush3.bf16.xpose.msra.mxu1 %v179_v35 }
 0x160   :  { %2212 = vmatprep.subr.msk.bf16.mxu1 %vm162_vm2, %v155_v29 }
 0x167   :  { %2035 = vmatpush3.bf16.xpose.msra.mxu1 %v176_v36 }
 0x16e   :  { %2037 = vmatmul.mubr.msk.bf16.vlgmr.msra.gmra.mxu1 %vm162_vm2, %v2446_v15 }
 0x16f   :  { %2040 = vmatprep.mubr.msk.bf16.mxu1 %vm162_vm2, %v2467_v27 }
 0x176   :  { %2041 = vmatmul.mubr.msk.bf16.gmra.mxu1 %vm162_vm2, %v2459_v24 }
 0x22e   :  { %v2038_v37 = vpop.f32.mrf.mxu1 }
 0x22f   :  { %v254_v38 = vmul.f32 0.28867513, %v2038_v37 }
 0x230   :  { %v221_v39 = vpop.f32.mrf.mxu1 }
 0x231   :  { %v252_v40 = vmul.f32 0.28867513, %v221_v39  ;;  %v267_v41 = vsel %vm260_vm3, %v254_v38, -inf }
 0x232   :  { %268 = vmax.xlane.f32.xlu0 %v267_v41  ;;  %v2039_v42 = vpop.f32.mrf.mxu1 }
 0x233   :  { %v255_v44 = vmul.f32 0.28867513, %v2039_v42  ;;  %v261_v46 = vsel %vm260_vm3, %v252_v40, -inf }
 0x234   :  { %v224_v43 = vpop.f32.mrf.mxu1 }
 0x235   :  { %v253_v45 = vmul.f32 0.28867513, %v224_v43  ;;  %v270_v51 = vsel %vm260_vm3, %v255_v44, -inf }
 0x236   :  { %262 = vmax.xlane.f32.xlu0 %v261_v46  ;;  %v2042_v47 = vpop.f32.mrf.mxu1 }
 0x237   :  { %v2487_v48 = vmul.f32 0.28867513, %v2042_v47  ;;  %v264_v49 = vsel %vm260_vm3, %v253_v45, -inf }
 0x238   :  { %265 = vmax.xlane.f32.xlu1 %v264_v49  ;;  %v237_v50 = vpop.f32.mrf.mxu1 }
 0x239   :  { %v256_v53 = vmul.f32 0.28867513, %v237_v50  ;;  %v279_v55 = vsel %vm260_vm3, %v2487_v48, -inf }
 0x23a   :  { %271 = vmax.xlane.f32.xlu0 %v270_v51  ;;  %v2043_v52 = vpop.f32.mrf.mxu1 }
 0x23b   :  { %v259_v54 = vmul.f32 0.28867513, %v2043_v52  ;;  %v273_v59 = vsel %vm260_vm3, %v256_v53, -inf }
 0x23c   :  { %280 = vmax.xlane.f32.xlu1 %v279_v55  ;;  %v240_v56 = vpop.f32.mrf.mxu1 }
 0x23d   :  { %v257_v57 = vmul.f32 0.28867513, %v240_v56  ;;  %v282_v58 = vsel %vm260_vm3, %v259_v54, -inf }
 0x23e   :  { %283 = vmax.xlane.f32.xlu0 %v282_v58 }
 0x23f   :  { %v276_v60 = vsel %vm260_vm3, %v257_v57, -inf }
 0x240   :  { %274 = vmax.xlane.f32.xlu1 %v273_v59 }
 0x242   :  { %277 = vmax.xlane.f32.xlu0 %v276_v60 }
 0x251   :  { %355 = vrot.lane.b32.xlu1 %v2446_v15, %s2374_s29 }
 0x258   :  { %357 = vrot.lane.b32.xlu0 %v2467_v27, %s2374_s29 }
 0x2bb   :  { %v269_v61 = vpop.xlane.xlu0 %268 }
 0x2bc   :  { %v287_v62 = vsub.f32 %v254_v38, %v269_v61 }
 0x2be   :  { %v297_v63 = vmul.f32 1.442695, %v287_v62 }
 0x2bf   :  { %v263_v3 = vpop.xlane.xlu0 %262 }
 0x2c0   :  { %2245 = vpow2.f32 %v297_v63  ;;  %v285_v4 = vsub.f32 %v252_v40, %v263_v3 }
 0x2c1   :  { %v266_v5 = vpop.xlane.xlu1 %265 }
 0x2c2   :  { %v293_v6 = vmul.f32 1.442695, %v285_v4  ;;  %v286_v7 = vsub.f32 %v253_v45, %v266_v5 }
 0x2c3   :  { %v272_v9 = vpop.xlane.xlu0 %271 }
 0x2c4   :  { %2247 = vpow2.f32 %v293_v6  ;;  %v288_v10 = vsub.f32 %v255_v44, %v272_v9  ;;  %v295_v12 = vmul.f32 1.442695, %v286_v7 }
 0x2c5   :  { %v281_v11 = vpop.xlane.xlu1 %280 }
 0x2c6   :  { %v299_v13 = vmul.f32 1.442695, %v288_v10  ;;  %v291_v32 = vsub.f32 %v2487_v48, %v281_v11 }
 0x2c7   :  { %v284_v14 = vpop.xlane.xlu0 %283 }
 0x2c8   :  { %2249 = vpow2.f32 %v299_v13  ;;  %v292_v33 = vsub.f32 %v259_v54, %v284_v14  ;;  %v305_v35 = vmul.f32 1.442695, %v291_v32 }
 0x2c9   :  { %2251 = vpow2.f32 %v295_v12  ;;  %v275_v16 = vpop.xlane.xlu1 %274 }
 0x2ca   :  { %v289_v31 = vsub.f32 %v256_v53, %v275_v16  ;;  %v307_v36 = vmul.f32 1.442695, %v292_v33 }
 0x2cb   :  { %v278_v17 = vpop.xlane.xlu0 %277 }
 0x2cc   :  { %v301_v34 = vmul.f32 1.442695, %v289_v31  ;;  %v290_v37 = vsub.f32 %v257_v57, %v278_v17  ;;  %v2237_v31 = vld [vmem:[%s2884_s3] sm:$0xff]  }
 0x2cd   :  { %v2500_v19 = vpop.eup %2245  ;;  %v356_v23 = vpop.permute.xlu1 %355 }
 0x2ce   :  { %v315_v20 = vsel %vm260_vm3, %v2500_v19, 0.0  ;;  %2253 = vpow2.f32 %v301_v34  ;;  %v303_v38 = vmul.f32 1.442695, %v290_v37 }
 0x2cf   :  { %316 = vadd.xlane.f32.xlu1 %v315_v20  ;;  %v358_v21 = vpop.permute.xlu0 %357  ;;  %2255 = vpow2.f32 %v305_v35 }
 0x2d0   :  { %2046 = vmatprep.subr.bf16.mxu0 %v358_v21  ;;  %2257 = vpow2.f32 %v307_v36 }
 0x2d1   :  { %v2504_v22 = vpop.eup %2247  ;;  %2047 = vmatpush3.bf16.msra.mxu0 %v358_v21  ;;  %2259 = vpow2.f32 %v303_v38 }
 0x2d2   :  { %2048 = vmatprep.subr.bf16.mxu0 %v356_v23  ;;  %v309_v25 = vsel %vm260_vm3, %v2504_v22, 0.0 }
 0x2d3   :  { %310 = vadd.xlane.f32.xlu1 %v309_v25 }
 0x2d5   :  { %v2250_v26 = vpop.eup %2249  ;;  %2049 = vmatpush3.bf16.msra.mxu0 %v356_v23 }
 0x2d6   :  { %v318_v28 = vsel %vm260_vm3, %v2250_v26, 0.0  ;;  %v2252_v29 = vpop.eup %2251 }
 0x2d7   :  { %319 = vadd.xlane.f32.xlu0 %v318_v28  ;;  %v312_v30 = vsel %vm260_vm3, %v2252_v29, 0.0 }
 0x2db   :  { %313 = vadd.xlane.f32.xlu0 %v312_v30  ;;  %v2517_v39 = vpop.eup %2253 }
 0x2dc   :  { %v2519_v40 = vpop.eup %2255  ;;  %v321_v41 = vsel %vm260_vm3, %v2517_v39, 0.0 }
 0x2dd   :  { %v2523_v42 = vpop.eup %2257  ;;  %v327_v44 = vsel %vm260_vm3, %v2519_v40, 0.0 }
 0x2de   :  { %v330_v43 = vsel %vm260_vm3, %v2523_v42, 0.0  ;;  %v2529_v45 = vpop.eup %2259 }
 0x2df   :  { %v324_v46 = vsel %vm260_vm3, %v2529_v45, 0.0 }
 0x2e4   :  { %462 = vrot.lane.b32.xlu1 %v2459_v24, %s2375_s30 }
 0x2e8   :  { %460 = vrot.lane.b32.xlu1 %v2467_v27, %s2375_s30 }
 0x2f1   :  { %353 = vrot.lane.b32.xlu0 %v2449_v18, %s2374_s29 }
 0x30c   :  { %322 = vadd.xlane.f32.xlu1 %v321_v41 }
 0x310   :  { %331 = vadd.xlane.f32.xlu1 %v330_v43  ;;  %328 = vadd.xlane.f32.xlu0 %v327_v44 }
 0x314   :  { %325 = vadd.xlane.f32.xlu0 %v324_v46 }
 0x321   :  { %456 = vrot.lane.b32.xlu1 %v2449_v18, %s2375_s30 }
 0x325   :  { %450 = vrot.lane.b32.xlu1 %v2446_v15, %s2376_s5 }
 0x329   :  { %454 = vrot.lane.b32.xlu1 %v2459_v24, %s2376_s5 }
 0x32a   :  { %458 = vrot.lane.b32.xlu0 %v2446_v15, %s2375_s30 }
 0x32e   :  { %448 = vrot.lane.b32.xlu0 %v2449_v18, %s2376_s5 }
 0x332   :  { %452 = vrot.lane.b32.xlu0 %v2467_v27, %s2376_s5 }
 0x358   :  { %v317_v47 = vpop.xlane.xlu1 %316 }
 0x35c   :  { %v311_v48 = vpop.xlane.xlu1 %310 }
 0x360   :  { %v320_v49 = vpop.xlane.xlu0 %319  ;;  %v463_v52 = vpop.permute.xlu1 %462 }
 0x361   :  { %2261 = vrcp.f32 %v320_v49  ;;  %v486_v63 = vsel %vm162_vm2, %v463_v52, 0 }
 0x362   :  { %2263 = vrcp.f32 %v311_v48 }
 0x363   :  { %2265 = vrcp.f32 %v317_v47 }
 0x364   :  { %v314_v50 = vpop.xlane.xlu0 %313  ;;  %v461_v3 = vpop.permute.xlu1 %460 }
 0x365   :  { %2267 = vrcp.f32 %v314_v50  ;;  %v483_v4 = vsel %vm162_vm2, %v461_v3, 0 }
 0x368   :  { %v354_v51 = vpop.permute.xlu0 %353 }
 0x369   :  { %2050 = vmatprep.subr.bf16.mxu0 %v354_v51 }
 0x36a   :  { %2051 = vmatpush3.bf16.msra.mxu0 %v354_v51 }
 0x36b   :  { %2213 = vmatprep.subr.msk.bf16.mxu0 %vm162_vm2, %v463_v52 }
 0x36e   :  { %v2262_v53 = vpop.eup %2261 }
 0x36f   :  { %v2264_v54 = vpop.eup %2263  ;;  %v344_v57 = vmul.f32 %v2262_v53, %v2250_v26 }
 0x370   :  { %v2266_v55 = vpop.eup %2265  ;;  %v341_v58 = vmul.f32 %v2264_v54, %v2504_v22 }
 0x371   :  { %v343_v60 = vmul.f32 %v2266_v55, %v2500_v19 }
 0x372   :  { %v2268_v56 = vpop.eup %2267 }
 0x373   :  { %v342_v59 = vmul.f32 %v2268_v56, %v2252_v29  ;;  %v350_v62 = vpack.c.bf16 %v344_v57, %v343_v60 }
 0x375   :  { %v349_v61 = vpack.c.bf16 %v342_v59, %v341_v58 }
 0x377   :  { %2052 = vmatprep.mubr.msk.bf16.mxu0 %vm260_vm3, %v349_v61 }
 0x378   :  { %2053 = vmatmul.mubr.msk.bf16.vlgmr.msra.gmra.mxu0 %vm260_vm3, %v350_v62 }
 0x379   :  { %2061 = vmatpush3.bf16.xpose.msra.mxu0 %v486_v63 }
 0x37a   :  { %2214 = vmatprep.subr.msk.bf16.mxu0 %vm162_vm2, %v461_v3 }
 0x381   :  { %2063 = vmatpush3.bf16.xpose.msra.mxu0 %v483_v4 }
 0x395   :  { %v323_v5 = vpop.xlane.xlu1 %322 }
 0x399   :  { %v332_v6 = vpop.xlane.xlu1 %331  ;;  %v329_v7 = vpop.xlane.xlu0 %328 }
 0x39a   :  { %2269 = vrcp.f32 %v332_v6 }
 0x39b   :  { %2271 = vrcp.f32 %v329_v7 }
 0x39c   :  { %2273 = vrcp.f32 %v323_v5 }
 0x39d   :  { %v326_v9 = vpop.xlane.xlu0 %325  ;;  %v457_v12 = vpop.permute.xlu1 %456 }
 0x39e   :  { %2275 = vrcp.f32 %v326_v9  ;;  %v477_v17 = vsel %vm162_vm2, %v457_v12, 0 }
 0x3a1   :  { %v459_v10 = vpop.permute.xlu0 %458  ;;  %v451_v29 = vpop.permute.xlu1 %450 }
 0x3a2   :  { %v480_v11 = vsel %vm162_vm2, %v459_v10, 0  ;;  %2215 = vmatprep.subr.msk.bf16.mxu0 %vm162_vm2, %v459_v10 }
 0x3a3   :  { %2065 = vmatpush3.bf16.xpose.msra.mxu0 %v480_v11 }
 0x3a4   :  { %2216 = vmatprep.subr.msk.bf16.mxu0 %vm162_vm2, %v457_v12 }
 0x3a5   :  { %v449_v28 = vpop.permute.xlu0 %448  ;;  %v455_v32 = vpop.permute.xlu1 %454 }
 0x3a7   :  { %v2270_v13 = vpop.eup %2269 }
 0x3a8   :  { %v2272_v14 = vpop.eup %2271  ;;  %v348_v21 = vmul.f32 %v2270_v13, %v2523_v42 }
 0x3a9   :  { %v2274_v16 = vpop.eup %2273  ;;  %v347_v20 = vmul.f32 %v2272_v14, %v2519_v40  ;;  %v453_v30 = vpop.permute.xlu0 %452 }
 0x3aa   :  { %v345_v22 = vmul.f32 %v2274_v16, %v2517_v39 }
 0x3ab   :  { %v2276_v19 = vpop.eup %2275  ;;  %2067 = vmatpush3.bf16.xpose.msra.mxu0 %v477_v17  ;;  %v352_v26 = vpack.c.bf16 %v348_v21, %v347_v20 }
 0x3ac   :  { %v346_v23 = vmul.f32 %v2276_v19, %v2529_v45  ;;  %2102 = vmatprep.subr.bf16.mxu0 %v2237_v31 }
 0x3ae   :  { %v351_v25 = vpack.c.bf16 %v346_v23, %v345_v22 }
 0x3b0   :  { %2056 = vmatprep.mubr.msk.bf16.mxu0 %vm260_vm3, %v351_v25 }
 0x3b1   :  { %2057 = vmatmul.mubr.msk.bf16.gmra.mxu0 %vm260_vm3, %v352_v26 }
 0x3b2   :  { %2068 = vmatprep.mubr.msk.bf16.mxu0 %vm162_vm2, %v449_v28 }
 0x3b9   :  { %2069 = vmatmul.mubr.msk.bf16.vlgmr.msra.gmra.mxu0 %vm162_vm2, %v451_v29 }
 0x3ba   :  { %2072 = vmatprep.mubr.msk.bf16.mxu0 %vm162_vm2, %v453_v30  ;;  %2103 = vmatpush3.bf16.msra.mxu0 %v2237_v31 }
 0x3c1   :  { %2073 = vmatmul.mubr.msk.bf16.gmra.mxu0 %vm162_vm2, %v455_v32 }
 0x438   :  { %v2054_v33 = vpop.f32.mrf.mxu0 }
 0x43a   :  { %v411_v34 = vpop.f32.mrf.mxu0 }
 0x43c   :  { %v2055_v35 = vpop.f32.mrf.mxu0 }
 0x43d   :  { %v443_v38 = vpack.c.bf16 %v2055_v35, %v2054_v33 }
 0x43e   :  { %v414_v36 = vpop.f32.mrf.mxu0 }
 0x43f   :  { %v442_v37 = vpack.c.bf16 %v414_v36, %v411_v34 }
 0x441   :  { %2104 = vmatprep.mubr.msk.bf16.mxu0 %vm162_vm2, %v442_v37 }
 0x442   :  { %2105 = vmatmul.mubr.msk.bf16.vlgmr.msra.gmra.mxu0 %vm162_vm2, %v443_v38 }
 0x471   :  { %v2058_v39 = vpop.f32.mrf.mxu0 }
 0x473   :  { %v427_v40 = vpop.f32.mrf.mxu0 }
 0x475   :  { %v2059_v41 = vpop.f32.mrf.mxu0 }
 0x476   :  { %v445_v44 = vpack.c.bf16 %v2059_v41, %v2058_v39 }
 0x477   :  { %v430_v42 = vpop.f32.mrf.mxu0 }
 0x478   :  { %v444_v43 = vpack.c.bf16 %v430_v42, %v427_v40 }
 0x479   :  { %v2070_v45 = vpop.f32.mrf.mxu0 }
 0x47a   :  { %2108 = vmatprep.mubr.msk.bf16.mxu0 %vm162_vm2, %v444_v43  ;;  %v555_v49 = vmul.f32 0.28867513, %v2070_v45 }
 0x47b   :  { %v522_v46 = vpop.f32.mrf.mxu0  ;;  %2109 = vmatmul.mubr.msk.bf16.gmra.mxu0 %vm162_vm2, %v445_v44 }
 0x47c   :  { %v553_v47 = vmul.f32 0.28867513, %v522_v46  ;;  %v567_v55 = vsel %vm260_vm3, %v555_v49, -inf }
 0x47d   :  { %v2071_v48 = vpop.f32.mrf.mxu0 }
 0x47e   :  { %v561_v50 = vsel %vm260_vm3, %v553_v47, -inf  ;;  %v556_v54 = vmul.f32 0.28867513, %v2071_v48 }
 0x47f   :  { %562 = vmax.xlane.f32.xlu0 %v561_v50  ;;  %v525_v51 = vpop.f32.mrf.mxu0 }
 0x480   :  { %v554_v52 = vmul.f32 0.28867513, %v525_v51  ;;  %v570_v61 = vsel %vm260_vm3, %v556_v54, -inf }
 0x481   :  { %v2074_v53 = vpop.f32.mrf.mxu0 }
 0x482   :  { %v564_v56 = vsel %vm260_vm3, %v554_v52, -inf  ;;  %v559_v60 = vmul.f32 0.28867513, %v2074_v53 }
 0x483   :  { %568 = vmax.xlane.f32.xlu0 %v567_v55  ;;  %565 = vmax.xlane.f32.xlu1 %v564_v56  ;;  %v538_v57 = vpop.f32.mrf.mxu0 }
 0x484   :  { %v557_v58 = vmul.f32 0.28867513, %v538_v57  ;;  %v579_v5 = vsel %vm260_vm3, %v559_v60, -inf }
 0x485   :  { %v2075_v59 = vpop.f32.mrf.mxu0 }
 0x486   :  { %v573_v62 = vsel %vm260_vm3, %v557_v58, -inf  ;;  %v560_v4 = vmul.f32 0.28867513, %v2075_v59 }
 0x487   :  { %571 = vmax.xlane.f32.xlu0 %v570_v61  ;;  %574 = vmax.xlane.f32.xlu1 %v573_v62  ;;  %v541_v63 = vpop.f32.mrf.mxu0 }
 0x488   :  { %v558_v3 = vmul.f32 0.28867513, %v541_v63  ;;  %v582_v7 = vsel %vm260_vm3, %v560_v4, -inf }
 0x48a   :  { %v576_v6 = vsel %vm260_vm3, %v558_v3, -inf }
 0x48b   :  { %580 = vmax.xlane.f32.xlu1 %v579_v5  ;;  %577 = vmax.xlane.f32.xlu0 %v576_v6 }
 0x48f   :  { %583 = vmax.xlane.f32.xlu0 %v582_v7 }
 0x49c   :  { %659 = vrot.lane.b32.xlu1 %v2459_v24, %s2377_s8 }
 0x508   :  { %v563_v9 = vpop.xlane.xlu0 %562 }
 0x509   :  { %v585_v10 = vsub.f32 %v553_v47, %v563_v9  ;;  %v2238_v9 = vld [vmem:[%s2884_s3 + $0x8] sm:$0xff]  }
 0x50b   :  { %v593_v16 = vmul.f32 1.442695, %v585_v10 }
 0x50c   :  { %v566_v11 = vpop.xlane.xlu1 %565  ;;  %v569_v12 = vpop.xlane.xlu0 %568 }
 0x50d   :  { %v587_v13 = vsub.f32 %v555_v49, %v569_v12  ;;  %v586_v17 = vsub.f32 %v554_v52, %v566_v11 }
 0x50f   :  { %v597_v14 = vmul.f32 1.442695, %v587_v13  ;;  %v595_v23 = vmul.f32 1.442695, %v586_v17 }
 0x510   :  { %v575_v19 = vpop.xlane.xlu1 %574  ;;  %v572_v20 = vpop.xlane.xlu0 %571 }
 0x511   :  { %v588_v21 = vsub.f32 %v556_v54, %v572_v20  ;;  %2277 = vpow2.f32 %v597_v14  ;;  %v589_v25 = vsub.f32 %v557_v58, %v575_v19 }
 0x512   :  { %2279 = vpow2.f32 %v593_v16 }
 0x513   :  { %v599_v22 = vmul.f32 1.442695, %v588_v21  ;;  %v601_v30 = vmul.f32 1.442695, %v589_v25 }
 0x514   :  { %v581_v26 = vpop.xlane.xlu1 %580  ;;  %v578_v28 = vpop.xlane.xlu0 %577 }
 0x515   :  { %v591_v29 = vsub.f32 %v559_v60, %v581_v26  ;;  %2281 = vpow2.f32 %v599_v22  ;;  %v590_v31 = vsub.f32 %v558_v3, %v578_v28 }
 0x516   :  { %2283 = vpow2.f32 %v595_v23 }
 0x517   :  { %v605_v24 = vmul.f32 1.442695, %v591_v29  ;;  %v603_v36 = vmul.f32 1.442695, %v590_v31 }
 0x518   :  { %v660_v32 = vpop.permute.xlu1 %659  ;;  %v584_v33 = vpop.xlane.xlu0 %583 }
 0x519   :  { %2285 = vpow2.f32 %v605_v24  ;;  %v592_v34 = vsub.f32 %v560_v4, %v584_v33  ;;  %2076 = vmatprep.subr.bf16.mxu1 %v660_v32 }
 0x51a   :  { %2077 = vmatpush3.bf16.msra.mxu1 %v660_v32  ;;  %2287 = vpow2.f32 %v601_v30 }
 0x51b   :  { %v607_v35 = vmul.f32 1.442695, %v592_v34 }
 0x51d   :  { %2289 = vpow2.f32 %v607_v35  ;;  %v2239_v35 = vld [vmem:[%s2882_s0 + $0x20] sm:$0xff]  }
 0x51e   :  { %v2584_v37 = vpop.eup %2277  ;;  %2291 = vpow2.f32 %v603_v36 }
 0x51f   :  { %v615_v38 = vsel %vm260_vm3, %v2584_v37, 0.0  ;;  %v2280_v39 = vpop.eup %2279 }
 0x520   :  { %616 = vadd.xlane.f32.xlu1 %v615_v38  ;;  %v609_v41 = vsel %vm260_vm3, %v2280_v39, 0.0  ;;  %v2106_v38 = vpop.f32.mrf.mxu0 }
 0x522   :  { %v2282_v40 = vpop.eup %2281 }
 0x523   :  { %v618_v42 = vsel %vm260_vm3, %v2282_v40, 0.0  ;;  %v2284_v43 = vpop.eup %2283 }
 0x524   :  { %610 = vadd.xlane.f32.xlu1 %v609_v41  ;;  %619 = vadd.xlane.f32.xlu0 %v618_v42  ;;  %v612_v46 = vsel %vm260_vm3, %v2284_v43, 0.0  ;;  %v2641_v42 = vld [vmem:[%s2883_s2 + $0x1] ss:$0 sm:$0xff] }
 0x526   :  { %v2590_v44 = vpop.eup %2285 }
 0x527   :  { %v627_v45 = vsel %vm260_vm3, %v2590_v44, 0.0  ;;  %v2288_v47 = vpop.eup %2287 }
 0x528   :  { %628 = vadd.xlane.f32.xlu1 %v627_v45  ;;  %613 = vadd.xlane.f32.xlu0 %v612_v46  ;;  %v621_v50 = vsel %vm260_vm3, %v2288_v47, 0.0 }
 0x52a   :  { %v2290_v48 = vpop.eup %2289 }
 0x52b   :  { %v630_v49 = vsel %vm260_vm3, %v2290_v48, 0.0  ;;  %v2292_v51 = vpop.eup %2291 }
 0x52c   :  { %622 = vadd.xlane.f32.xlu1 %v621_v50  ;;  %631 = vadd.xlane.f32.xlu0 %v630_v49  ;;  %v624_v52 = vsel %vm260_vm3, %v2292_v51, 0.0 }
 0x530   :  { %625 = vadd.xlane.f32.xlu0 %v624_v52 }
 0x53d   :  { %655 = vrot.lane.b32.xlu1 %v2446_v15, %s2377_s8 }
 0x541   :  { %653 = vrot.lane.b32.xlu1 %v2449_v18, %s2377_s8 }
 0x546   :  { %657 = vrot.lane.b32.xlu0 %v2467_v27, %s2377_s8 }
 0x5a9   :  { %v617_v53 = vpop.xlane.xlu1 %616 }
 0x5ad   :  { %v611_v54 = vpop.xlane.xlu1 %610  ;;  %v620_v55 = vpop.xlane.xlu0 %619 }
 0x5ae   :  { %2293 = vrcp.f32 %v611_v54 }
 0x5b1   :  { %v629_v56 = vpop.xlane.xlu1 %628  ;;  %v614_v57 = vpop.xlane.xlu0 %613 }
 0x5b2   :  { %2295 = vrcp.f32 %v614_v57 }
 0x5b3   :  { %2297 = vrcp.f32 %v620_v55 }
 0x5b4   :  { %2299 = vrcp.f32 %v617_v53 }
 0x5b5   :  { %v623_v58 = vpop.xlane.xlu1 %622  ;;  %v632_v59 = vpop.xlane.xlu0 %631 }
 0x5b6   :  { %2301 = vrcp.f32 %v623_v58 }
 0x5b9   :  { %v626_v60 = vpop.xlane.xlu0 %625  ;;  %v656_v15 = vpop.permute.xlu1 %655 }
 0x5ba   :  { %2303 = vrcp.f32 %v626_v60 }
 0x5bb   :  { %2305 = vrcp.f32 %v632_v59  ;;  %v2294_v61 = vpop.eup %2293 }
 0x5bc   :  { %2307 = vrcp.f32 %v629_v56  ;;  %v641_v63 = vmul.f32 %v2294_v61, %v2280_v39  ;;  %v884_v39 = vpop.f32.mrf.mxu0 }
 0x5bd   :  { %v658_v18 = vpop.permute.xlu0 %657  ;;  %v654_v5 = vpop.permute.xlu1 %653 }
 0x5be   :  { %2078 = vmatprep.subr.bf16.mxu1 %v658_v18 }
 0x5bf   :  { %2079 = vmatpush3.bf16.msra.mxu1 %v658_v18  ;;  %v2296_v27 = vpop.eup %2295 }
 0x5c0   :  { %2080 = vmatprep.subr.bf16.mxu1 %v656_v15  ;;  %v2298_v62 = vpop.eup %2297  ;;  %v642_v3 = vmul.f32 %v2296_v27, %v2284_v43 }
 0x5c1   :  { %v2300_v4 = vpop.eup %2299  ;;  %v644_v7 = vmul.f32 %v2298_v62, %v2282_v40  ;;  %v2107_v40 = vpop.f32.mrf.mxu0 }
 0x5c2   :  { %v649_v6 = vpack.c.bf16 %v642_v3, %v641_v63  ;;  %v643_v11 = vmul.f32 %v2300_v4, %v2584_v37  ;;  %v2241_v37 = vld [vmem:[%s2882_s0 + $0x30] sm:$0xff]  }
 0x5c3   :  { %2081 = vmatpush3.bf16.msra.mxu1 %v656_v15  ;;  %v2302_v10 = vpop.eup %2301  ;;  %v887_v41 = vpop.f32.mrf.mxu0 }
 0x5c4   :  { %2082 = vmatprep.subr.bf16.mxu1 %v654_v5  ;;  %2084 = vmatprep.mubr.msk.bf16.mxu1 %vm260_vm3, %v649_v6  ;;  %v650_v13 = vpack.c.bf16 %v644_v7, %v643_v11  ;;  %v645_v14 = vmul.f32 %v2302_v10, %v2288_v47 }
 0x5c5   :  { %v2110_v45 = vpop.f32.mrf.mxu0 }
 0x5c7   :  { %v2304_v12 = vpop.eup %2303  ;;  %2083 = vmatpush3.bf16.msra.mxu1 %v654_v5  ;;  %v900_v52 = vpop.f32.mrf.mxu0 }
 0x5c8   :  { %v646_v16 = vmul.f32 %v2304_v12, %v2292_v51  ;;  %2092 = vmatprep.subr.bf16.mxu1 %v2238_v9  ;;  %v2306_v17 = vpop.eup %2305 }
 0x5c9   :  { %v2308_v20 = vpop.eup %2307  ;;  %v648_v21 = vmul.f32 %v2306_v17, %v2290_v48  ;;  %v2111_v59 = vpop.f32.mrf.mxu0 }
 0x5ca   :  { %2085 = vmatmul.mubr.msk.bf16.vlgmr.msra.gmra.mxu1 %vm260_vm3, %v650_v13  ;;  %v651_v19 = vpack.c.bf16 %v646_v16, %v645_v14  ;;  %v647_v22 = vmul.f32 %v2308_v20, %v2590_v44 }
 0x5cb   :  { %2093 = vmatpush3.bf16.msra.mxu1 %v2238_v9  ;;  %v903_v63 = vpop.f32.mrf.mxu0 }
 0x5cc   :  { %2088 = vmatprep.mubr.msk.bf16.mxu1 %vm260_vm3, %v651_v19  ;;  %2217 = vmatprep.subr.msk.bf16.mxu1 %vm77_vm0, %v2406_v0  ;;  %v652_v23 = vpack.c.bf16 %v648_v21, %v647_v22 }
 0x5d2   :  { %2089 = vmatmul.mubr.msk.bf16.gmra.mxu1 %vm260_vm3, %v652_v23 }
 0x68a   :  { %v2086_v25 = vpop.f32.mrf.mxu1 }
 0x68c   :  { %v711_v26 = vpop.f32.mrf.mxu1 }
 0x68e   :  { %v2087_v28 = vpop.f32.mrf.mxu1 }
 0x68f   :  { %v743_v30 = vpack.c.bf16 %v2087_v28, %v2086_v25 }
 0x690   :  { %v714_v29 = vpop.f32.mrf.mxu1 }
 0x691   :  { %v742_v24 = vpack.c.bf16 %v714_v29, %v711_v26 }
 0x692   :  { %v2090_v31 = vpop.f32.mrf.mxu1 }
 0x693   :  { %2094 = vmatprep.mubr.msk.bf16.mxu1 %vm162_vm2, %v742_v24 }
 0x694   :  { %v727_v32 = vpop.f32.mrf.mxu1  ;;  %2095 = vmatmul.mubr.msk.bf16.vlgmr.msra.gmra.mxu1 %vm162_vm2, %v743_v30 }
 0x695   :  { %2113 = vmatpush3.bf16.msra.mxu1 %v2417_v2  ;;  %v2240_v2 = vld [vmem:[%s2882_s0 + $0x28] sm:$0xff]  }
 0x696   :  { %v2091_v0 = vpop.f32.mrf.mxu1  ;;  %2114 = vmatprep.subr.bf16.mxu1 %v2411_v1 }
 0x697   :  { %v745_v36 = vpack.c.bf16 %v2091_v0, %v2090_v31 }
 0x698   :  { %v730_v33 = vpop.f32.mrf.mxu1 }
 0x699   :  { %v744_v34 = vpack.c.bf16 %v730_v33, %v727_v32  ;;  %2115 = vmatpush3.bf16.msra.mxu1 %v2411_v1  ;;  %v2242_v1 = vld [vmem:[%s2882_s0 + $0x38] sm:$0xff]  }
 0x69b   :  { %2098 = vmatprep.mubr.msk.bf16.mxu1 %vm162_vm2, %v744_v34 }
 0x69c   :  { %2099 = vmatmul.mubr.msk.bf16.gmra.mxu1 %vm162_vm2, %v745_v36 }
 0x69d   :  { %2116 = vmatprep.mubr.msk.bf16.mxu1 %vm64_vm1, %v2239_v35 }
 0x6a4   :  { %2117 = vmatmul.mubr.msk.bf16.vlgmr.msra.gmra.mxu1 %vm64_vm1, %v2240_v2 }
 0x6a5   :  { %2120 = vmatprep.mubr.msk.bf16.mxu1 %vm64_vm1, %v2241_v37 }
 0x6ac   :  { %2121 = vmatmul.mubr.msk.bf16.gmra.mxu1 %vm64_vm1, %v2242_v1 }
 0x754   :  { %v2096_v43 = vpop.f32.mrf.mxu1 }
 0x755   :  { %v893_v44 = vadd.f32 %v2106_v38, %v2096_v43 }
 0x756   :  { %v801_v46 = vpop.f32.mrf.mxu1 }
 0x757   :  { %v921_v47 = vadd.f32 %v2641_v42, %v893_v44  ;;  %v885_v48 = vadd.f32 %v884_v39, %v801_v46 }
 0x758   :  { %v2097_v49 = vpop.f32.mrf.mxu1 }
 0x759   :  { %929 = vst [vmem:[%s2885_s4 + $0x10] sm:$0xff] %v921_v47  ;;  %v919_v50 = vadd.f32 %v2641_v42, %v885_v48  ;;  %v896_v51 = vadd.f32 %v2107_v40, %v2097_v49 }
 0x75a   :  { %v804_v53 = vpop.f32.mrf.mxu1 }
 0x75b   :  { %927 = vst [vmem:[%s2885_s4] sm:$0xff] %v919_v50  ;;  %v922_v54 = vadd.f32 %v2641_v42, %v896_v51  ;;  %v888_v55 = vadd.f32 %v887_v41, %v804_v53 }
 0x75c   :  { %v2100_v56 = vpop.f32.mrf.mxu1 }
 0x75d   :  { %930 = vst [vmem:[%s2885_s4 + $0x18] sm:$0xff] %v922_v54  ;;  %v920_v57 = vadd.f32 %v2641_v42, %v888_v55  ;;  %v909_v58 = vadd.f32 %v2110_v45, %v2100_v56 }
 0x75e   :  { %v817_v60 = vpop.f32.mrf.mxu1 }
 0x75f   :  { %928 = vst [vmem:[%s2885_s4 + $0x8] sm:$0xff] %v920_v57  ;;  %v925_v15 = vadd.f32 %v2641_v42, %v909_v58  ;;  %v901_v18 = vadd.f32 %v900_v52, %v817_v60 }
 0x760   :  { %v2101_v61 = vpop.f32.mrf.mxu1 }
 0x761   :  { %933 = vst [vmem:[%s2885_s4 + $0x30] sm:$0xff] %v925_v15  ;;  %v923_v27 = vadd.f32 %v2641_v42, %v901_v18  ;;  %v912_v62 = vadd.f32 %v2111_v59, %v2101_v61 }
 0x762   :  { %v820_v3 = vpop.f32.mrf.mxu1 }
 0x763   :  { %931 = vst [vmem:[%s2885_s4 + $0x20] sm:$0xff] %v923_v27  ;;  %v926_v4 = vadd.f32 %v2641_v42, %v912_v62  ;;  %v904_v5 = vadd.f32 %v903_v63, %v820_v3 }
 0x764   :  { %v2118_v6 = vpop.f32.mrf.mxu1 }
 0x765   :  { %934 = vst [vmem:[%s2885_s4 + $0x38] sm:$0xff] %v926_v4  ;;  %v924_v7 = vadd.f32 %v2641_v42, %v904_v5  ;;  %v1019_v29 = vadd.f32 %v2118_v6, %v2441_v8 }
 0x766   :  { %v1010_v9 = vpop.f32.mrf.mxu1 }
 0x767   :  { %932 = vst [vmem:[%s2885_s4 + $0x28] sm:$0xff] %v924_v7  ;;  %v1011_v12 = vadd.f32 %v2441_v8, %v1010_v9 }
 0x768   :  { %v2119_v10 = vpop.f32.mrf.mxu1 }
 0x769   :  { %v1022_v23 = vadd.f32 %v2119_v10, %v2441_v8 }
 0x76a   :  { %v1013_v11 = vpop.f32.mrf.mxu1 }
 0x76b   :  { %v1014_v13 = vadd.f32 %v2441_v8, %v1013_v11  ;;  %v2693_v30 = vpack.c.bf16 %v1022_v23, %v1019_v29 }
 0x76c   :  { %v2122_v14 = vpop.f32.mrf.mxu1 }
 0x76d   :  { %v2677_v16 = vpack.c.bf16 %v1014_v13, %v1011_v12  ;;  %v1035_v20 = vadd.f32 %v2122_v14, %v2441_v8 }
 0x76e   :  { %v1026_v17 = vpop.f32.mrf.mxu1 }
 0x76f   :  { %2132 = vmatprep.mubr.msk.bf16.mxu0 %vm162_vm2, %v2677_v16  ;;  %v1027_v25 = vadd.f32 %v2441_v8, %v1026_v17 }
 0x770   :  { %v2123_v19 = vpop.f32.mrf.mxu1 }
 0x771   :  { %v1038_v21 = vadd.f32 %v2123_v19, %v2441_v8 }
 0x772   :  { %v1029_v22 = vpop.f32.mrf.mxu1 }
 0x773   :  { %v2685_v26 = vpack.c.bf16 %v1038_v21, %v1035_v20  ;;  %v1030_v28 = vadd.f32 %v2441_v8, %v1029_v22 }
 0x775   :  { %v2689_v24 = vpack.c.bf16 %v1030_v28, %v1027_v25  ;;  %1055 = vrot.lane.b32.xlu0 %v2685_v26, %s2373_s28 }
 0x777   :  { %1053 = vrot.lane.b32.xlu1 %v2689_v24, %s2373_s28 }
 0x779   :  { %1051 = vrot.lane.b32.xlu0 %v2693_v30, %s2373_s28 }
 0x77b   :  { %1049 = vrot.lane.b32.xlu1 %v2677_v16, %s2373_s28 }
 0x77f   :  { %1252 = vrot.lane.b32.xlu1 %v2685_v26, %s2374_s29 }
 0x7e7   :  { %v1056_v8 = vpop.permute.xlu0 %1055 }
 0x7e8   :  { %v1079_v31 = vsel %vm162_vm2, %v1056_v8, 0  ;;  %2218 = vmatprep.subr.msk.bf16.mxu0 %vm162_vm2, %v1056_v8 }
 0x7e9   :  { %2125 = vmatpush3.bf16.xpose.msra.mxu0 %v1079_v31  ;;  %v1054_v32 = vpop.permute.xlu1 %1053 }
 0x7ea   :  { %2219 = vmatprep.subr.msk.bf16.mxu0 %vm162_vm2, %v1054_v32  ;;  %v1076_v33 = vsel %vm162_vm2, %v1054_v32, 0 }
 0x7eb   :  { %v1052_v34 = vpop.permute.xlu0 %1051 }
 0x7ec   :  { %v1073_v36 = vsel %vm162_vm2, %v1052_v34, 0 }
 0x7ed   :  { %v1050_v0 = vpop.permute.xlu1 %1049 }
 0x7ee   :  { %v1070_v2 = vsel %vm162_vm2, %v1050_v0, 0 }
 0x7f1   :  { %2127 = vmatpush3.bf16.xpose.msra.mxu0 %v1076_v33  ;;  %v1253_v35 = vpop.permute.xlu1 %1252 }
 0x7f2   :  { %2220 = vmatprep.subr.msk.bf16.mxu0 %vm162_vm2, %v1052_v34  ;;  %2140 = vmatprep.subr.bf16.mxu1 %v1253_v35 }
 0x7f3   :  { %2141 = vmatpush3.bf16.msra.mxu1 %v1253_v35 }
 0x7f9   :  { %2129 = vmatpush3.bf16.xpose.msra.mxu0 %v1073_v36 }
 0x7fa   :  { %2221 = vmatprep.subr.msk.bf16.mxu0 %vm162_vm2, %v1050_v0 }
 0x801   :  { %2131 = vmatpush3.bf16.xpose.msra.mxu0 %v1070_v2 }
 0x808   :  { %2133 = vmatmul.mubr.msk.bf16.vlgmr.msra.gmra.mxu0 %vm162_vm2, %v2693_v30 }
 0x809   :  { %2136 = vmatprep.mubr.msk.bf16.mxu0 %vm162_vm2, %v2689_v24 }
 0x810   :  { %2137 = vmatmul.mubr.msk.bf16.gmra.mxu0 %vm162_vm2, %v2685_v26 }
 0x8c8   :  { %v2134_v37 = vpop.f32.mrf.mxu0 }
 0x8c9   :  { %v1148_v1 = vmul.f32 0.28867513, %v2134_v37 }
 0x8ca   :  { %v1115_v38 = vpop.f32.mrf.mxu0 }
 0x8cb   :  { %v1146_v39 = vmul.f32 0.28867513, %v1115_v38  ;;  %v1160_v40 = vsel %vm260_vm3, %v1148_v1, -inf }
 0x8cc   :  { %1161 = vmax.xlane.f32.xlu0 %v1160_v40  ;;  %v2135_v41 = vpop.f32.mrf.mxu0 }
 0x8cd   :  { %v1149_v44 = vmul.f32 0.28867513, %v2135_v41  ;;  %v1154_v46 = vsel %vm260_vm3, %v1146_v39, -inf }
 0x8ce   :  { %v1118_v43 = vpop.f32.mrf.mxu0 }
 0x8cf   :  { %v1147_v45 = vmul.f32 0.28867513, %v1118_v43  ;;  %v1163_v51 = vsel %vm260_vm3, %v1149_v44, -inf }
 0x8d0   :  { %1155 = vmax.xlane.f32.xlu0 %v1154_v46  ;;  %v2138_v47 = vpop.f32.mrf.mxu0 }
 0x8d1   :  { %v2719_v48 = vmul.f32 0.28867513, %v2138_v47  ;;  %v1157_v49 = vsel %vm260_vm3, %v1147_v45, -inf }
 0x8d2   :  { %1158 = vmax.xlane.f32.xlu1 %v1157_v49  ;;  %v1131_v50 = vpop.f32.mrf.mxu0 }
 0x8d3   :  { %v1150_v53 = vmul.f32 0.28867513, %v1131_v50  ;;  %v1172_v55 = vsel %vm260_vm3, %v2719_v48, -inf }
 0x8d4   :  { %1164 = vmax.xlane.f32.xlu0 %v1163_v51  ;;  %v2139_v52 = vpop.f32.mrf.mxu0 }
 0x8d5   :  { %v1153_v54 = vmul.f32 0.28867513, %v2139_v52  ;;  %v1166_v59 = vsel %vm260_vm3, %v1150_v53, -inf }
 0x8d6   :  { %1173 = vmax.xlane.f32.xlu1 %v1172_v55  ;;  %v1134_v56 = vpop.f32.mrf.mxu0 }
 0x8d7   :  { %v1151_v57 = vmul.f32 0.28867513, %v1134_v56  ;;  %v1175_v58 = vsel %vm260_vm3, %v1153_v54, -inf }
 0x8d8   :  { %1176 = vmax.xlane.f32.xlu0 %v1175_v58 }
 0x8d9   :  { %v1169_v60 = vsel %vm260_vm3, %v1151_v57, -inf }
 0x8da   :  { %1167 = vmax.xlane.f32.xlu1 %v1166_v59 }
 0x8dc   :  { %1170 = vmax.xlane.f32.xlu0 %v1169_v60 }
 0x8eb   :  { %1248 = vrot.lane.b32.xlu1 %v2693_v30, %s2374_s29 }
 0x8f2   :  { %1250 = vrot.lane.b32.xlu0 %v2689_v24, %s2374_s29 }
 0x955   :  { %v1162_v15 = vpop.xlane.xlu0 %1161 }
 0x956   :  { %v1180_v18 = vsub.f32 %v1148_v1, %v1162_v15 }
 0x958   :  { %v1190_v61 = vmul.f32 1.442695, %v1180_v18 }
 0x959   :  { %v1156_v27 = vpop.xlane.xlu0 %1155 }
 0x95a   :  { %2309 = vpow2.f32 %v1190_v61  ;;  %v1178_v62 = vsub.f32 %v1146_v39, %v1156_v27 }
 0x95b   :  { %v1159_v63 = vpop.xlane.xlu1 %1158 }
 0x95c   :  { %v1186_v3 = vmul.f32 1.442695, %v1178_v62  ;;  %v1179_v4 = vsub.f32 %v1147_v45, %v1159_v63 }
 0x95d   :  { %v1165_v5 = vpop.xlane.xlu0 %1164 }
 0x95e   :  { %2311 = vpow2.f32 %v1186_v3  ;;  %v1181_v6 = vsub.f32 %v1149_v44, %v1165_v5  ;;  %v1188_v9 = vmul.f32 1.442695, %v1179_v4 }
 0x95f   :  { %v1174_v7 = vpop.xlane.xlu1 %1173 }
 0x960   :  { %v1192_v10 = vmul.f32 1.442695, %v1181_v6  ;;  %v1184_v31 = vsub.f32 %v2719_v48, %v1174_v7 }
 0x961   :  { %v1177_v11 = vpop.xlane.xlu0 %1176 }
 0x962   :  { %2313 = vpow2.f32 %v1192_v10  ;;  %v1185_v32 = vsub.f32 %v1153_v54, %v1177_v11  ;;  %v1198_v33 = vmul.f32 1.442695, %v1184_v31 }
 0x963   :  { %2315 = vpow2.f32 %v1188_v9  ;;  %v1168_v12 = vpop.xlane.xlu1 %1167 }
 0x964   :  { %v1182_v8 = vsub.f32 %v1150_v53, %v1168_v12  ;;  %v1200_v34 = vmul.f32 1.442695, %v1185_v32 }
 0x965   :  { %v1171_v13 = vpop.xlane.xlu0 %1170 }
 0x966   :  { %v1194_v0 = vmul.f32 1.442695, %v1182_v8  ;;  %v1183_v35 = vsub.f32 %v1151_v57, %v1171_v13 }
 0x967   :  { %v2732_v14 = vpop.eup %2309  ;;  %v1249_v21 = vpop.permute.xlu1 %1248 }
 0x968   :  { %v1208_v17 = vsel %vm260_vm3, %v2732_v14, 0.0  ;;  %2317 = vpow2.f32 %v1194_v0  ;;  %v1196_v36 = vmul.f32 1.442695, %v1183_v35 }
 0x969   :  { %1209 = vadd.xlane.f32.xlu1 %v1208_v17  ;;  %v1251_v19 = vpop.permute.xlu0 %1250  ;;  %2319 = vpow2.f32 %v1198_v33 }
 0x96a   :  { %2142 = vmatprep.subr.bf16.mxu1 %v1251_v19  ;;  %2321 = vpow2.f32 %v1200_v34 }
 0x96b   :  { %v2736_v20 = vpop.eup %2311  ;;  %2143 = vmatpush3.bf16.msra.mxu1 %v1251_v19  ;;  %2323 = vpow2.f32 %v1196_v36 }
 0x96c   :  { %2144 = vmatprep.subr.bf16.mxu1 %v1249_v21  ;;  %v1202_v22 = vsel %vm260_vm3, %v2736_v20, 0.0 }
 0x96d   :  { %1203 = vadd.xlane.f32.xlu1 %v1202_v22 }
 0x96f   :  { %v2314_v23 = vpop.eup %2313  ;;  %2145 = vmatpush3.bf16.msra.mxu1 %v1249_v21 }
 0x970   :  { %v1211_v25 = vsel %vm260_vm3, %v2314_v23, 0.0  ;;  %v2316_v28 = vpop.eup %2315 }
 0x971   :  { %1212 = vadd.xlane.f32.xlu0 %v1211_v25  ;;  %v1205_v29 = vsel %vm260_vm3, %v2316_v28, 0.0  ;;  %v2243_v25 = vld [vmem:[%s2884_s3] sm:$0xff]  }
 0x975   :  { %1206 = vadd.xlane.f32.xlu0 %v1205_v29  ;;  %v2749_v2 = vpop.eup %2317 }
 0x976   :  { %v2751_v37 = vpop.eup %2319  ;;  %v1214_v1 = vsel %vm260_vm3, %v2749_v2, 0.0 }
 0x977   :  { %v2755_v38 = vpop.eup %2321  ;;  %v1220_v40 = vsel %vm260_vm3, %v2751_v37, 0.0 }
 0x978   :  { %v1223_v39 = vsel %vm260_vm3, %v2755_v38, 0.0  ;;  %v2761_v41 = vpop.eup %2323 }
 0x979   :  { %v1217_v43 = vsel %vm260_vm3, %v2761_v41, 0.0 }
 0x97e   :  { %1355 = vrot.lane.b32.xlu1 %v2685_v26, %s2375_s30 }
 0x982   :  { %1353 = vrot.lane.b32.xlu1 %v2689_v24, %s2375_s30 }
 0x98b   :  { %1246 = vrot.lane.b32.xlu0 %v2677_v16, %s2374_s29 }
 0x9a6   :  { %1215 = vadd.xlane.f32.xlu1 %v1214_v1 }
 0x9aa   :  { %1224 = vadd.xlane.f32.xlu1 %v1223_v39  ;;  %1221 = vadd.xlane.f32.xlu0 %v1220_v40 }
 0x9ae   :  { %1218 = vadd.xlane.f32.xlu0 %v1217_v43 }
 0x9bb   :  { %1349 = vrot.lane.b32.xlu1 %v2677_v16, %s2375_s30 }
 0x9bf   :  { %1343 = vrot.lane.b32.xlu1 %v2693_v30, %s2376_s5 }
 0x9c3   :  { %1347 = vrot.lane.b32.xlu1 %v2685_v26, %s2376_s5 }
 0x9c4   :  { %1351 = vrot.lane.b32.xlu0 %v2693_v30, %s2375_s30 }
 0x9c8   :  { %1341 = vrot.lane.b32.xlu0 %v2677_v16, %s2376_s5 }
 0x9cc   :  { %1345 = vrot.lane.b32.xlu0 %v2689_v24, %s2376_s5 }
 0x9f2   :  { %v1210_v44 = vpop.xlane.xlu1 %1209 }
 0x9f6   :  { %v1204_v45 = vpop.xlane.xlu1 %1203 }
 0x9fa   :  { %v1213_v46 = vpop.xlane.xlu0 %1212  ;;  %v1356_v49 = vpop.permute.xlu1 %1355 }
 0x9fb   :  { %2325 = vrcp.f32 %v1213_v46  ;;  %v1379_v60 = vsel %vm162_vm2, %v1356_v49, 0 }
 0x9fc   :  { %2327 = vrcp.f32 %v1204_v45 }
 0x9fd   :  { %2329 = vrcp.f32 %v1210_v44 }
 0x9fe   :  { %v1207_v47 = vpop.xlane.xlu0 %1206  ;;  %v1354_v15 = vpop.permute.xlu1 %1353 }
 0x9ff   :  { %2331 = vrcp.f32 %v1207_v47  ;;  %v1376_v18 = vsel %vm162_vm2, %v1354_v15, 0 }
 0xa02   :  { %v1247_v48 = vpop.permute.xlu0 %1246 }
 0xa03   :  { %2146 = vmatprep.subr.bf16.mxu1 %v1247_v48 }
 0xa04   :  { %2147 = vmatpush3.bf16.msra.mxu1 %v1247_v48 }
 0xa05   :  { %2222 = vmatprep.subr.msk.bf16.mxu1 %vm162_vm2, %v1356_v49 }
 0xa08   :  { %v2326_v50 = vpop.eup %2325 }
 0xa09   :  { %v2328_v51 = vpop.eup %2327  ;;  %v1237_v54 = vmul.f32 %v2326_v50, %v2314_v23 }
 0xa0a   :  { %v2330_v52 = vpop.eup %2329  ;;  %v1234_v55 = vmul.f32 %v2328_v51, %v2736_v20 }
 0xa0b   :  { %v1236_v57 = vmul.f32 %v2330_v52, %v2732_v14 }
 0xa0c   :  { %v2332_v53 = vpop.eup %2331 }
 0xa0d   :  { %v1235_v56 = vmul.f32 %v2332_v53, %v2316_v28  ;;  %v1243_v59 = vpack.c.bf16 %v1237_v54, %v1236_v57 }
 0xa0f   :  { %v1242_v58 = vpack.c.bf16 %v1235_v56, %v1234_v55 }
 0xa11   :  { %2148 = vmatprep.mubr.msk.bf16.mxu1 %vm260_vm3, %v1242_v58 }
 0xa12   :  { %2149 = vmatmul.mubr.msk.bf16.vlgmr.msra.gmra.mxu1 %vm260_vm3, %v1243_v59 }
 0xa13   :  { %2157 = vmatpush3.bf16.xpose.msra.mxu1 %v1379_v60 }
 0xa14   :  { %2223 = vmatprep.subr.msk.bf16.mxu1 %vm162_vm2, %v1354_v15 }
 0xa1b   :  { %2159 = vmatpush3.bf16.xpose.msra.mxu1 %v1376_v18 }
 0xa2f   :  { %v1216_v61 = vpop.xlane.xlu1 %1215 }
 0xa33   :  { %v1225_v27 = vpop.xlane.xlu1 %1224  ;;  %v1222_v62 = vpop.xlane.xlu0 %1221 }
 0xa34   :  { %2333 = vrcp.f32 %v1225_v27 }
 0xa35   :  { %2335 = vrcp.f32 %v1222_v62 }
 0xa36   :  { %2337 = vrcp.f32 %v1216_v61 }
 0xa37   :  { %v1219_v63 = vpop.xlane.xlu0 %1218  ;;  %v1350_v5 = vpop.permute.xlu1 %1349 }
 0xa38   :  { %2339 = vrcp.f32 %v1219_v63  ;;  %v1370_v10 = vsel %vm162_vm2, %v1350_v5, 0 }
 0xa3b   :  { %v1352_v3 = vpop.permute.xlu0 %1351  ;;  %v1344_v22 = vpop.permute.xlu1 %1343 }
 0xa3c   :  { %v1373_v4 = vsel %vm162_vm2, %v1352_v3, 0  ;;  %2224 = vmatprep.subr.msk.bf16.mxu1 %vm162_vm2, %v1352_v3 }
 0xa3d   :  { %2161 = vmatpush3.bf16.xpose.msra.mxu1 %v1373_v4 }
 0xa3e   :  { %2225 = vmatprep.subr.msk.bf16.mxu1 %vm162_vm2, %v1350_v5 }
 0xa3f   :  { %v1342_v21 = vpop.permute.xlu0 %1341  ;;  %v1348_v28 = vpop.permute.xlu1 %1347 }
 0xa41   :  { %v2334_v6 = vpop.eup %2333 }
 0xa42   :  { %v2336_v7 = vpop.eup %2335  ;;  %v1241_v13 = vmul.f32 %v2334_v6, %v2755_v38 }
 0xa43   :  { %v2338_v9 = vpop.eup %2337  ;;  %v1240_v12 = vmul.f32 %v2336_v7, %v2751_v37  ;;  %v1346_v23 = vpop.permute.xlu0 %1345 }
 0xa44   :  { %v1238_v14 = vmul.f32 %v2338_v9, %v2749_v2 }
 0xa45   :  { %v2340_v11 = vpop.eup %2339  ;;  %2163 = vmatpush3.bf16.xpose.msra.mxu1 %v1370_v10  ;;  %v1245_v20 = vpack.c.bf16 %v1241_v13, %v1240_v12 }
 0xa46   :  { %v1239_v17 = vmul.f32 %v2340_v11, %v2761_v41  ;;  %2198 = vmatprep.subr.bf16.mxu1 %v2243_v25 }
 0xa48   :  { %v1244_v19 = vpack.c.bf16 %v1239_v17, %v1238_v14 }
 0xa4a   :  { %2152 = vmatprep.mubr.msk.bf16.mxu1 %vm260_vm3, %v1244_v19 }
 0xa4b   :  { %2153 = vmatmul.mubr.msk.bf16.gmra.mxu1 %vm260_vm3, %v1245_v20 }
 0xa4c   :  { %2164 = vmatprep.mubr.msk.bf16.mxu1 %vm162_vm2, %v1342_v21 }
 0xa53   :  { %2165 = vmatmul.mubr.msk.bf16.vlgmr.msra.gmra.mxu1 %vm162_vm2, %v1344_v22 }
 0xa54   :  { %2168 = vmatprep.mubr.msk.bf16.mxu1 %vm162_vm2, %v1346_v23  ;;  %2199 = vmatpush3.bf16.msra.mxu1 %v2243_v25 }
 0xa5b   :  { %2169 = vmatmul.mubr.msk.bf16.gmra.mxu1 %vm162_vm2, %v1348_v28 }
 0xad2   :  { %v2150_v29 = vpop.f32.mrf.mxu1 }
 0xad4   :  { %v1304_v8 = vpop.f32.mrf.mxu1 }
 0xad6   :  { %v2151_v31 = vpop.f32.mrf.mxu1 }
 0xad7   :  { %v1336_v33 = vpack.c.bf16 %v2151_v31, %v2150_v29 }
 0xad8   :  { %v1307_v32 = vpop.f32.mrf.mxu1 }
 0xad9   :  { %v1335_v0 = vpack.c.bf16 %v1307_v32, %v1304_v8 }
 0xadb   :  { %2200 = vmatprep.mubr.msk.bf16.mxu1 %vm162_vm2, %v1335_v0 }
 0xadc   :  { %2201 = vmatmul.mubr.msk.bf16.vlgmr.msra.gmra.mxu1 %vm162_vm2, %v1336_v33 }
 0xb0b   :  { %v2154_v34 = vpop.f32.mrf.mxu1 }
 0xb0d   :  { %v1320_v35 = vpop.f32.mrf.mxu1 }
 0xb0f   :  { %v2155_v36 = vpop.f32.mrf.mxu1 }
 0xb10   :  { %v1338_v1 = vpack.c.bf16 %v2155_v36, %v2154_v34 }
 0xb11   :  { %v1323_v2 = vpop.f32.mrf.mxu1 }
 0xb12   :  { %v1337_v37 = vpack.c.bf16 %v1323_v2, %v1320_v35 }
 0xb13   :  { %v2166_v38 = vpop.f32.mrf.mxu1 }
 0xb14   :  { %2204 = vmatprep.mubr.msk.bf16.mxu1 %vm162_vm2, %v1337_v37  ;;  %v1448_v43 = vmul.f32 0.28867513, %v2166_v38 }
 0xb15   :  { %v1415_v39 = vpop.f32.mrf.mxu1  ;;  %2205 = vmatmul.mubr.msk.bf16.gmra.mxu1 %vm162_vm2, %v1338_v1 }
 0xb16   :  { %v1446_v40 = vmul.f32 0.28867513, %v1415_v39  ;;  %v1460_v49 = vsel %vm260_vm3, %v1448_v43, -inf }
 0xb17   :  { %v2167_v41 = vpop.f32.mrf.mxu1 }
 0xb18   :  { %v1454_v44 = vsel %vm260_vm3, %v1446_v40, -inf  ;;  %v1449_v48 = vmul.f32 0.28867513, %v2167_v41 }
 0xb19   :  { %1455 = vmax.xlane.f32.xlu0 %v1454_v44  ;;  %v1418_v45 = vpop.f32.mrf.mxu1 }
 0xb1a   :  { %v1447_v46 = vmul.f32 0.28867513, %v1418_v45  ;;  %v1463_v55 = vsel %vm260_vm3, %v1449_v48, -inf }
 0xb1b   :  { %v2170_v47 = vpop.f32.mrf.mxu1 }
 0xb1c   :  { %v1457_v50 = vsel %vm260_vm3, %v1447_v46, -inf  ;;  %v1452_v54 = vmul.f32 0.28867513, %v2170_v47 }
 0xb1d   :  { %1461 = vmax.xlane.f32.xlu0 %v1460_v49  ;;  %1458 = vmax.xlane.f32.xlu1 %v1457_v50  ;;  %v1431_v51 = vpop.f32.mrf.mxu1 }
 0xb1e   :  { %v1450_v52 = vmul.f32 0.28867513, %v1431_v51  ;;  %v1472_v60 = vsel %vm260_vm3, %v1452_v54, -inf }
 0xb1f   :  { %v2171_v53 = vpop.f32.mrf.mxu1 }
 0xb20   :  { %v1466_v56 = vsel %vm260_vm3, %v1450_v52, -inf  ;;  %v1453_v59 = vmul.f32 0.28867513, %v2171_v53 }
 0xb21   :  { %1464 = vmax.xlane.f32.xlu0 %v1463_v55  ;;  %1467 = vmax.xlane.f32.xlu1 %v1466_v56  ;;  %v1434_v57 = vpop.f32.mrf.mxu1 }
 0xb22   :  { %v1451_v58 = vmul.f32 0.28867513, %v1434_v57  ;;  %v1475_v18 = vsel %vm260_vm3, %v1453_v59, -inf }
 0xb24   :  { %v1469_v15 = vsel %vm260_vm3, %v1451_v58, -inf }
 0xb25   :  { %1473 = vmax.xlane.f32.xlu1 %v1472_v60  ;;  %1470 = vmax.xlane.f32.xlu0 %v1469_v15  ;;  %v2244_v60 = vld [vmem:[%s2884_s3 + $0x8] sm:$0xff]  }
 0xb29   :  { %1476 = vmax.xlane.f32.xlu0 %v1475_v18 }
 0xb36   :  { %1552 = vrot.lane.b32.xlu1 %v2685_v26, %s2377_s8 }
 0xba2   :  { %v1456_v61 = vpop.xlane.xlu0 %1455 }
 0xba3   :  { %v1478_v27 = vsub.f32 %v1446_v40, %v1456_v61 }
 0xba5   :  { %v1486_v5 = vmul.f32 1.442695, %v1478_v27 }
 0xba6   :  { %v1459_v62 = vpop.xlane.xlu1 %1458  ;;  %v1462_v63 = vpop.xlane.xlu0 %1461 }
 0xba7   :  { %v1480_v3 = vsub.f32 %v1448_v43, %v1462_v63  ;;  %v1479_v6 = vsub.f32 %v1447_v46, %v1459_v62 }
 0xba9   :  { %v1490_v4 = vmul.f32 1.442695, %v1480_v3  ;;  %v1488_v12 = vmul.f32 1.442695, %v1479_v6 }
 0xbaa   :  { %v1468_v7 = vpop.xlane.xlu1 %1467  ;;  %v1465_v9 = vpop.xlane.xlu0 %1464 }
 0xbab   :  { %v1481_v10 = vsub.f32 %v1449_v48, %v1465_v9  ;;  %2341 = vpow2.f32 %v1490_v4  ;;  %v1482_v13 = vsub.f32 %v1450_v52, %v1468_v7 }
 0xbac   :  { %2343 = vpow2.f32 %v1486_v5 }
 0xbad   :  { %v1492_v11 = vmul.f32 1.442695, %v1481_v10  ;;  %v1494_v20 = vmul.f32 1.442695, %v1482_v13 }
 0xbae   :  { %v1474_v14 = vpop.xlane.xlu1 %1473  ;;  %v1471_v17 = vpop.xlane.xlu0 %1470 }
 0xbaf   :  { %v1484_v19 = vsub.f32 %v1452_v54, %v1474_v14  ;;  %2345 = vpow2.f32 %v1492_v11  ;;  %v1483_v21 = vsub.f32 %v1451_v58, %v1471_v17 }
 0xbb0   :  { %2347 = vpow2.f32 %v1488_v12 }
 0xbb1   :  { %v1498_v26 = vmul.f32 1.442695, %v1484_v19  ;;  %v1496_v29 = vmul.f32 1.442695, %v1483_v21 }
 0xbb2   :  { %v1553_v22 = vpop.permute.xlu1 %1552  ;;  %v1477_v23 = vpop.xlane.xlu0 %1476 }
 0xbb3   :  { %2349 = vpow2.f32 %v1498_v26  ;;  %v1485_v25 = vsub.f32 %v1453_v59, %v1477_v23  ;;  %2172 = vmatprep.subr.bf16.mxu0 %v1553_v22 }
 0xbb4   :  { %2173 = vmatpush3.bf16.msra.mxu0 %v1553_v22  ;;  %2351 = vpow2.f32 %v1494_v20 }
 0xbb5   :  { %v1500_v28 = vmul.f32 1.442695, %v1485_v25  ;;  %v2202_v25 = vpop.f32.mrf.mxu1 }
 0xbb7   :  { %2353 = vpow2.f32 %v1500_v28  ;;  %v1776_v28 = vpop.f32.mrf.mxu1 }
 0xbb8   :  { %v2816_v8 = vpop.eup %2341  ;;  %2355 = vpow2.f32 %v1496_v29 }
 0xbb9   :  { %v1508_v31 = vsel %vm260_vm3, %v2816_v8, 0.0  ;;  %v2344_v32 = vpop.eup %2343  ;;  %v2203_v29 = vpop.f32.mrf.mxu1 }
 0xbba   :  { %1509 = vadd.xlane.f32.xlu1 %v1508_v31  ;;  %v1502_v33 = vsel %vm260_vm3, %v2344_v32, 0.0 }
 0xbbc   :  { %v2346_v0 = vpop.eup %2345 }
 0xbbd   :  { %v1511_v34 = vsel %vm260_vm3, %v2346_v0, 0.0  ;;  %v2348_v35 = vpop.eup %2347 }
 0xbbe   :  { %1503 = vadd.xlane.f32.xlu1 %v1502_v33  ;;  %1512 = vadd.xlane.f32.xlu0 %v1511_v34  ;;  %v1505_v37 = vsel %vm260_vm3, %v2348_v35, 0.0 }
 0xbc0   :  { %v2822_v36 = vpop.eup %2349 }
 0xbc1   :  { %v1520_v2 = vsel %vm260_vm3, %v2822_v36, 0.0  ;;  %v2352_v1 = vpop.eup %2351 }
 0xbc2   :  { %1521 = vadd.xlane.f32.xlu1 %v1520_v2  ;;  %1506 = vadd.xlane.f32.xlu0 %v1505_v37  ;;  %v1514_v40 = vsel %vm260_vm3, %v2352_v1, 0.0 }
 0xbc4   :  { %v2354_v38 = vpop.eup %2353 }
 0xbc5   :  { %v1523_v39 = vsel %vm260_vm3, %v2354_v38, 0.0  ;;  %v2356_v41 = vpop.eup %2355 }
 0xbc6   :  { %1515 = vadd.xlane.f32.xlu1 %v1514_v40  ;;  %1524 = vadd.xlane.f32.xlu0 %v1523_v39  ;;  %v1517_v43 = vsel %vm260_vm3, %v2356_v41, 0.0 }
 0xbca   :  { %1518 = vadd.xlane.f32.xlu0 %v1517_v43 }
 0xbd7   :  { %1548 = vrot.lane.b32.xlu1 %v2693_v30, %s2377_s8 }
 0xbdb   :  { %1546 = vrot.lane.b32.xlu1 %v2677_v16, %s2377_s8 }
 0xbe0   :  { %1550 = vrot.lane.b32.xlu0 %v2689_v24, %s2377_s8 }
 0xc43   :  { %v1510_v44 = vpop.xlane.xlu1 %1509 }
 0xc47   :  { %v1504_v45 = vpop.xlane.xlu1 %1503  ;;  %v1513_v46 = vpop.xlane.xlu0 %1512 }
 0xc48   :  { %2357 = vrcp.f32 %v1504_v45 }
 0xc4b   :  { %v1522_v47 = vpop.xlane.xlu1 %1521  ;;  %v1507_v48 = vpop.xlane.xlu0 %1506 }
 0xc4c   :  { %2359 = vrcp.f32 %v1507_v48 }
 0xc4d   :  { %2361 = vrcp.f32 %v1513_v46 }
 0xc4e   :  { %2363 = vrcp.f32 %v1510_v44 }
 0xc4f   :  { %v1516_v49 = vpop.xlane.xlu1 %1515  ;;  %v1525_v50 = vpop.xlane.xlu0 %1524 }
 0xc50   :  { %2365 = vrcp.f32 %v1516_v49 }
 0xc53   :  { %v1519_v51 = vpop.xlane.xlu0 %1518  ;;  %v1549_v30 = vpop.permute.xlu1 %1548 }
 0xc54   :  { %2367 = vrcp.f32 %v1519_v51 }
 0xc55   :  { %2369 = vrcp.f32 %v1525_v50  ;;  %v2358_v52 = vpop.eup %2357 }
 0xc56   :  { %2371 = vrcp.f32 %v1522_v47  ;;  %v1534_v54 = vmul.f32 %v2358_v52, %v2344_v32 }
 0xc57   :  { %v1551_v16 = vpop.permute.xlu0 %1550  ;;  %v1547_v57 = vpop.permute.xlu1 %1546 }
 0xc58   :  { %2174 = vmatprep.subr.bf16.mxu0 %v1551_v16 }
 0xc59   :  { %2175 = vmatpush3.bf16.msra.mxu0 %v1551_v16  ;;  %v2360_v24 = vpop.eup %2359 }
 0xc5a   :  { %2176 = vmatprep.subr.bf16.mxu0 %v1549_v30  ;;  %v2362_v53 = vpop.eup %2361  ;;  %v1535_v55 = vmul.f32 %v2360_v24, %v2348_v35 }
 0xc5b   :  { %v2364_v56 = vpop.eup %2363  ;;  %v1537_v59 = vmul.f32 %v2362_v53, %v2346_v0 }
 0xc5c   :  { %v1542_v58 = vpack.c.bf16 %v1535_v55, %v1534_v54  ;;  %v1536_v18 = vmul.f32 %v2364_v56, %v2816_v8  ;;  %v1779_v8 = vpop.f32.mrf.mxu1 }
 0xc5d   :  { %2177 = vmatpush3.bf16.msra.mxu0 %v1549_v30  ;;  %v2366_v15 = vpop.eup %2365 }
 0xc5e   :  { %2178 = vmatprep.subr.bf16.mxu0 %v1547_v57  ;;  %2180 = vmatprep.mubr.msk.bf16.mxu0 %vm260_vm3, %v1542_v58  ;;  %v1543_v27 = vpack.c.bf16 %v1537_v59, %v1536_v18  ;;  %v1538_v62 = vmul.f32 %v2366_v15, %v2352_v1  ;;  %v2206_v0 = vpop.f32.mrf.mxu1 }
 0xc60   :  { %v1792_v1 = vpop.f32.mrf.mxu1 }
 0xc61   :  { %v2368_v61 = vpop.eup %2367  ;;  %2179 = vmatpush3.bf16.msra.mxu0 %v1547_v57 }
 0xc62   :  { %v1539_v63 = vmul.f32 %v2368_v61, %v2356_v41  ;;  %2188 = vmatprep.subr.bf16.mxu0 %v2244_v60  ;;  %v2370_v3 = vpop.eup %2369  ;;  %v2207_v45 = vpop.f32.mrf.mxu1 }
 0xc63   :  { %v2372_v5 = vpop.eup %2371  ;;  %v1541_v6 = vmul.f32 %v2370_v3, %v2354_v38 }
 0xc64   :  { %2181 = vmatmul.mubr.msk.bf16.vlgmr.msra.gmra.mxu0 %vm260_vm3, %v1543_v27  ;;  %v1544_v4 = vpack.c.bf16 %v1539_v63, %v1538_v62  ;;  %v1540_v7 = vmul.f32 %v2372_v5, %v2822_v36  ;;  %v1795_v30 = vpop.f32.mrf.mxu1 }
 0xc65   :  { %2189 = vmatpush3.bf16.msra.mxu0 %v2244_v60 }
 0xc66   :  { %2184 = vmatprep.mubr.msk.bf16.mxu0 %vm260_vm3, %v1544_v4  ;;  %v1545_v9 = vpack.c.bf16 %v1541_v6, %v1540_v7 }
 0xc6c   :  { %2185 = vmatmul.mubr.msk.bf16.gmra.mxu0 %vm260_vm3, %v1545_v9 }
 0xd24   :  { %v2182_v10 = vpop.f32.mrf.mxu0 }
 0xd26   :  { %v1604_v11 = vpop.f32.mrf.mxu0 }
 0xd28   :  { %v2183_v12 = vpop.f32.mrf.mxu0 }
 0xd29   :  { %v1636_v17 = vpack.c.bf16 %v2183_v12, %v2182_v10 }
 0xd2a   :  { %v1607_v13 = vpop.f32.mrf.mxu0 }
 0xd2b   :  { %v1635_v14 = vpack.c.bf16 %v1607_v13, %v1604_v11 }
 0xd2c   :  { %v2186_v19 = vpop.f32.mrf.mxu0 }
 0xd2d   :  { %2190 = vmatprep.mubr.msk.bf16.mxu0 %vm162_vm2, %v1635_v14 }
 0xd2e   :  { %v1620_v26 = vpop.f32.mrf.mxu0  ;;  %2191 = vmatmul.mubr.msk.bf16.vlgmr.msra.gmra.mxu0 %vm162_vm2, %v1636_v17 }
 0xd30   :  { %v2187_v20 = vpop.f32.mrf.mxu0 }
 0xd31   :  { %v1638_v23 = vpack.c.bf16 %v2187_v20, %v2186_v19 }
 0xd32   :  { %v1623_v21 = vpop.f32.mrf.mxu0 }
 0xd33   :  { %v1637_v22 = vpack.c.bf16 %v1623_v21, %v1620_v26 }
 0xd35   :  { %2194 = vmatprep.mubr.msk.bf16.mxu0 %vm162_vm2, %v1637_v22 }
 0xd36   :  { %2195 = vmatmul.mubr.msk.bf16.gmra.mxu0 %vm162_vm2, %v1638_v23 }
 0xdee   :  { %v2192_v31 = vpop.f32.mrf.mxu0 }
 0xdef   :  { %v1785_v32 = vadd.f32 %v2202_v25, %v2192_v31 }
 0xdf0   :  { %v1693_v33 = vpop.f32.mrf.mxu0 }
 0xdf1   :  { %v1809_v34 = vadd.f32 %v2641_v42, %v1785_v32  ;;  %v1777_v35 = vadd.f32 %v1776_v28, %v1693_v33 }
 0xdf2   :  { %v2193_v36 = vpop.f32.mrf.mxu0 }
 0xdf3   :  { %1914 = vst [vmem:[%s2885_s4 + $0x50] sm:$0xff] %v1809_v34  ;;  %v1807_v2 = vadd.f32 %v2641_v42, %v1777_v35  ;;  %v1788_v37 = vadd.f32 %v2203_v29, %v2193_v36 }
 0xdf4   :  { %v1696_v38 = vpop.f32.mrf.mxu0 }
 0xdf5   :  { %1912 = vst [vmem:[%s2885_s4 + $0x40] sm:$0xff] %v1807_v2  ;;  %v1810_v39 = vadd.f32 %v2641_v42, %v1788_v37  ;;  %v1780_v40 = vadd.f32 %v1779_v8, %v1696_v38 }
 0xdf6   :  { %v2196_v41 = vpop.f32.mrf.mxu0 }
 0xdf7   :  { %1915 = vst [vmem:[%s2885_s4 + $0x58] sm:$0xff] %v1810_v39  ;;  %v1808_v43 = vadd.f32 %v2641_v42, %v1780_v40  ;;  %v1801_v44 = vadd.f32 %v2206_v0, %v2196_v41 }
 0xdf8   :  { %v1709_v46 = vpop.f32.mrf.mxu0 }
 0xdf9   :  { %1913 = vst [vmem:[%s2885_s4 + $0x48] sm:$0xff] %v1808_v43  ;;  %v1813_v47 = vadd.f32 %v2641_v42, %v1801_v44  ;;  %v1793_v48 = vadd.f32 %v1792_v1, %v1709_v46 }
 0xdfa   :  { %v2197_v49 = vpop.f32.mrf.mxu0 }
 0xdfb   :  { %1918 = vst [vmem:[%s2885_s4 + $0x70] sm:$0xff] %v1813_v47  ;;  %v1811_v50 = vadd.f32 %v2641_v42, %v1793_v48  ;;  %v1804_v51 = vadd.f32 %v2207_v45, %v2197_v49 }
 0xdfc   :  { %v1712_v16 = vpop.f32.mrf.mxu0 }
 0xdfd   :  { %1916 = vst [vmem:[%s2885_s4 + $0x60] sm:$0xff] %v1811_v50  ;;  %v1814_v52 = vadd.f32 %v2641_v42, %v1804_v51  ;;  %v1796_v24 = vadd.f32 %v1795_v30, %v1712_v16 }
 0xdff   :  { %1919 = vst [vmem:[%s2885_s4 + $0x78] sm:$0xff] %v1814_v52  ;;  %v1812_v53 = vadd.f32 %v2641_v42, %v1796_v24 }
 0xe01   :  { %1917 = vst [vmem:[%s2885_s4 + $0x68] sm:$0xff] %v1812_v53 }

</bundles_post_ra>
